<compile_context>
chip_gen: v7x
topology: tpu7x:2x2x1
jax: 0.10.0
libtpu: 0.0.40
codegen_flags: <defaults>
</compile_context>

<pallas_src>
import functools

import numpy as np
import jax
import jax.numpy as jnp
from jax import lax
from jax.experimental import pallas as pl
from jax.experimental.pallas import tpu as pltpu

EPS = 1e-5
EXPANSION = 4
LANE = 128
VMEM_LIMIT = 48 * 1024 * 1024   # safe on v7x (64 MiB physical VMEM)


# --------------------------------------------------------------------------
# Small helpers
# --------------------------------------------------------------------------
def _round_up(x, m):
    return (x + m - 1) // m * m


def _pick_tile(m, cap=512):
    """Largest row tile that divides m, is a multiple of 16 (bf16 sublane
    packing) and <= cap; prefers >= 2 grid steps so DMA overlaps compute.
    Falls back to the full extent (always a legal block)."""
    best = None
    for t in range(min(m, cap), 15, -1):
        if m % t == 0 and t % 16 == 0:
            if m // t >= 2:
                return t
            if best is None:
                best = t
    return best if best is not None else m


def _cparams():
    return pltpu.CompilerParams(dimension_semantics=("parallel",),
                                vmem_limit_bytes=VMEM_LIMIT)


def _pad_cols(a, c_to):
    c = a.shape[-1]
    if c == c_to:
        return a
    pad = [(0, 0)] * (a.ndim - 1) + [(0, c_to - c)]
    return jnp.pad(a, pad)


# --------------------------------------------------------------------------
# Kernels
# --------------------------------------------------------------------------
def _mm_stats_kernel(x_ref, w_ref, y_ref, st_ref):
    """1x1 conv as matmul (bf16 operands, f32 MXU accumulation) + per-tile
    per-channel sum / sum-of-squares for training-mode BatchNorm."""
    y = jnp.dot(x_ref[...], w_ref[...], preferred_element_type=jnp.float32)
    y_ref[...] = y
    st_ref[:, pl.ds(0, 1), :] = jnp.sum(y, axis=0, keepdims=True)[None]
    st_ref[:, pl.ds(1, 1), :] = jnp.sum(y * y, axis=0, keepdims=True)[None]


def _bn_mm_stats_kernel(y_ref, s_ref, t_ref, w_ref, o_ref, st_ref):
    """Apply folded BN (scale/shift) + ReLU, then 1x1 conv + next-BN stats."""
    h = jnp.maximum(y_ref[...] * s_ref[...] + t_ref[...], 0.0)
    y = jnp.dot(h.astype(jnp.bfloat16), w_ref[...],
                preferred_element_type=jnp.float32)
    o_ref[...] = y
    st_ref[:, pl.ds(0, 1), :] = jnp.sum(y, axis=0, keepdims=True)[None]
    st_ref[:, pl.ds(1, 1), :] = jnp.sum(y * y, axis=0, keepdims=True)[None]


def _conv3x3_kernel(y1_ref, s1_ref, t1_ref, w2_ref, y2_ref, st_ref, slab_ref,
                    *, stride):
    """Per batch element: folded bn1 + ReLU, zero-padded 3x3 conv (stride),
    bn2 stats.  The padded slab lives in VMEM; only the halo ring is zeroed."""
    _, hp2, wp2, pp = slab_ref.shape
    h, w = hp2 - 2, wp2 - 2
    ho = (h - 1) // stride + 1
    wo = (w - 1) // stride + 1

    # bn1 (folded scale/shift) + relu on this batch element's conv1 output
    s1 = s1_ref[...].reshape(1, 1, 1, pp)
    t1 = t1_ref[...].reshape(1, 1, 1, pp)
    h1 = jnp.maximum(y1_ref[...] * s1 + t1, 0.0)           # (1, h, w, pp) f32

    # zero only the halo ring (interior is fully overwritten right after)
    zr = jnp.zeros((1, 1, wp2, pp), jnp.float32)
    zc = jnp.zeros((1, hp2, 1, pp), jnp.float32)
    slab_ref[:, pl.ds(0, 1), :, :] = zr
    slab_ref[:, pl.ds(hp2 - 1, 1), :, :] = zr
    slab_ref[:, :, pl.ds(0, 1), :] = zc
    slab_ref[:, :, pl.ds(wp2 - 1, 1), :] = zc
    slab_ref[:, pl.ds(1, h), pl.ds(1, w), :] = h1

    # 9-tap conv as MXU dots (K = padded planes, a multiple of 128),
    # register-carried accumulator, single store.
    w2 = w2_ref[...]                                        # (3, 3, pp, pp) bf16
    acc = None
    for kh in range(3):
        for kw in range(3):
            hs = pl.ds(kh, ho) if stride == 1 else pl.ds(kh, ho, stride)
            ws = pl.ds(kw, wo) if stride == 1 else pl.ds(kw, wo, stride)
            patch = slab_ref[:, hs, ws, :].reshape(ho * wo, pp)
            d = jnp.dot(patch.astype(jnp.bfloat16), w2[kh, kw],
                        preferred_element_type=jnp.float32)
            acc = d if acc is None else acc + d
    y2_ref[...] = acc
    st_ref[:, pl.ds(0, 1), :] = jnp.sum(acc, axis=0, keepdims=True)[None]
    st_ref[:, pl.ds(1, 1), :] = jnp.sum(acc * acc, axis=0, keepdims=True)[None]


def _residual_kernel(y3_ref, s3_ref, t3_ref, sc_ref, ss_ref, ts_ref, o_ref):
    """Folded bn3 + (folded shortcut BN or identity) + residual add + ReLU."""
    y3 = y3_ref[...] * s3_ref[...] + t3_ref[...]
    sc = sc_ref[...] * ss_ref[...] + ts_ref[...]
    o_ref[...] = jnp.maximum(y3 + sc, 0.0)


# --------------------------------------------------------------------------
# pallas_call wrappers (tiled, pipelined, "parallel" grids)
# --------------------------------------------------------------------------
def _conv1x1_stats(x2d_bf, w_bf):
    m, k = x2d_bf.shape
    c = w_bf.shape[1]
    tm = _pick_tile(m)
    g = m // tm
    return pl.pallas_call(
        _mm_stats_kernel,
        out_shape=(jax.ShapeDtypeStruct((m, c), jnp.float32),
                   jax.ShapeDtypeStruct((g, 2, c), jnp.float32)),
        grid=(g,),
        in_specs=[pl.BlockSpec((tm, k), lambda i: (i, 0)),
                  pl.BlockSpec((k, c), lambda i: (0, 0))],
        out_specs=(pl.BlockSpec((tm, c), lambda i: (i, 0)),
                   pl.BlockSpec((1, 2, c), lambda i: (i, 0, 0))),
        compiler_params=_cparams(),
    )(x2d_bf, w_bf)


def _conv3x3_stats(y1_4d, scale1, shift1, w2_bf, *, stride):
    n, h, w, p = y1_4d.shape
    ho = (h - 1) // stride + 1
    wo = (w - 1) // stride + 1
    m2 = n * ho * wo
    return pl.pallas_call(
        functools.partial(_conv3x3_kernel, stride=stride),
        out_shape=(jax.ShapeDtypeStruct((m2, p), jnp.float32),
                   jax.ShapeDtypeStruct((n, 2, p), jnp.float32)),
        grid=(n,),
        in_specs=[pl.BlockSpec((1, h, w, p), lambda i: (i, 0, 0, 0)),
                  pl.BlockSpec((1, p), lambda i: (0, 0)),
                  pl.BlockSpec((1, p), lambda i: (0, 0)),
                  pl.BlockSpec((3, 3, p, p), lambda i: (0, 0, 0, 0))],
        out_specs=(pl.BlockSpec((ho * wo, p), lambda i: (i, 0)),
                   pl.BlockSpec((1, 2, p), lambda i: (i, 0, 0))),
        scratch_shapes=[pltpu.VMEM((1, h + 2, w + 2, p), jnp.float32)],
        compiler_params=_cparams(),
    )(y1_4d, scale1, shift1, w2_bf)


def _bn_relu_conv1x1_stats(y, scale, shift, w_bf):
    m, p = y.shape
    c = w_bf.shape[1]
    tm = _pick_tile(m)
    g = m // tm
    return pl.pallas_call(
        _bn_mm_stats_kernel,
        out_shape=(jax.ShapeDtypeStruct((m, c), jnp.float32),
                   jax.ShapeDtypeStruct((g, 2, c), jnp.float32)),
        grid=(g,),
        in_specs=[pl.BlockSpec((tm, p), lambda i: (i, 0)),
                  pl.BlockSpec((1, p), lambda i: (0, 0)),
                  pl.BlockSpec((1, p), lambda i: (0, 0)),
                  pl.BlockSpec((p, c), lambda i: (0, 0))],
        out_specs=(pl.BlockSpec((tm, c), lambda i: (i, 0)),
                   pl.BlockSpec((1, 2, c), lambda i: (i, 0, 0))),
        compiler_params=_cparams(),
    )(y, scale, shift, w_bf)


def _residual_apply(y3, s3, t3, sc, ssc, tsc):
    m, c = y3.shape
    tm = _pick_tile(m)
    return pl.pallas_call(
        _residual_kernel,
        out_shape=jax.ShapeDtypeStruct((m, c), jnp.float32),
        grid=(m // tm,),
        in_specs=[pl.BlockSpec((tm, c), lambda i: (i, 0)),
                  pl.BlockSpec((1, c), lambda i: (0, 0)),
                  pl.BlockSpec((1, c), lambda i: (0, 0)),
                  pl.BlockSpec((tm, c), lambda i: (i, 0)),
                  pl.BlockSpec((1, c), lambda i: (0, 0)),
                  pl.BlockSpec((1, c), lambda i: (0, 0))],
        out_specs=pl.BlockSpec((tm, c), lambda i: (i, 0)),
        compiler_params=_cparams(),
    )(y3, s3, t3, sc, ssc, tsc)


def _fold_bn(stats, gamma, beta, count, c_pad):
    """Combine per-tile sum / sum-of-squares into folded BN scale/shift
    (training-mode: batch mean, biased variance).  Padded channels get
    gamma=0 / beta=0 so they stay exactly zero."""
    s = jnp.sum(stats[:, 0, :], axis=0)
    ss = jnp.sum(stats[:, 1, :], axis=0)
    mean = s / count
    var = jnp.maximum(ss / count - mean * mean, 0.0)
    g = _pad_cols(gamma.reshape(1, -1).astype(jnp.float32), c_pad)
    b = _pad_cols(beta.reshape(1, -1).astype(jnp.float32), c_pad)
    scale = g * lax.rsqrt(var + EPS)
    shift = b - mean.reshape(1, -1) * scale
    return scale, shift


# --------------------------------------------------------------------------
# Bottleneck forward
# --------------------------------------------------------------------------
def bottleneck_forward_nhwc(x, params, *, stride):
    n, h, w, cin = x.shape
    planes = params["w1"].shape[1]
    cout = params["w3"].shape[1]
    ho = (h - 1) // stride + 1
    wo = (w - 1) // stride + 1
    m1, m2 = n * h * w, n * ho * wo
    has_proj = "ws" in params

    cin_p = _round_up(cin, LANE)
    p_p = _round_up(planes, LANE)
    cout_p = _round_up(cout, LANE)
    f32, bf16 = jnp.float32, jnp.bfloat16

    # Wrapper-side glue (cheap/free in XLA): 2D views, lane-dense channel
    # padding, one-time bf16 casts, stride-2 shortcut subsample.
    x = x.astype(f32)
    x2d = _pad_cols(x.reshape(m1, cin), cin_p)            # (m1, cin_p) f32
    x2d_bf = x2d.astype(bf16)
    w1 = jnp.pad(params["w1"], ((0, cin_p - cin), (0, p_p - planes))).astype(bf16)
    w2 = jnp.pad(params["w2"],
                 ((0, 0), (0, 0), (0, p_p - planes), (0, p_p - planes))).astype(bf16)
    w3 = jnp.pad(params["w3"], ((0, p_p - planes), (0, cout_p - cout))).astype(bf16)

    # conv1 (1x1) + bn1 batch stats
    y1, st1 = _conv1x1_stats(x2d_bf, w1)
    scale1, shift1 = _fold_bn(st1, params["g1"], params["b1"], m1, p_p)

    # bn1+relu -> zero-padded 3x3 conv (stride) -> bn2 batch stats
    y2, st2 = _conv3x3_stats(y1.reshape(n, h, w, p_p), scale1, shift1, w2,
                             stride=stride)
    scale2, shift2 = _fold_bn(st2, params["g2"], params["b2"], m2, p_p)

    # bn2+relu -> conv3 (1x1) -> bn3 batch stats
    y3, st3 = _bn_relu_conv1x1_stats(y2, scale2, shift2, w3)
    scale3, shift3 = _fold_bn(st3, params["g3"], params["b3"], m2, cout_p)

    # shortcut: projection conv + BN (stats kernel reused) or exact f32 identity
    if has_proj:
        xs = x[:, ::stride, ::stride, :][:, :ho, :wo, :]
        xs2d_bf = _pad_cols(xs.reshape(m2, cin), cin_p).astype(bf16)
        ws = jnp.pad(params["ws"], ((0, cin_p - cin), (0, cout_p - cout))).astype(bf16)
        sc, sts = _conv1x1_stats(xs2d_bf, ws)
        scale_s, shift_s = _fold_bn(sts, params["gs"], params["bs"], m2, cout_p)
    else:
        sc = x2d                                          # identity (stride==1, cin==cout)
        scale_s = jnp.ones((1, cout_p), f32)
        shift_s = jnp.zeros((1, cout_p), f32)

    # bn3 + shortcut-BN + residual add + relu
    out = _residual_apply(y3, scale3, shift3, sc, scale_s, shift_s)
    return out[:, :cout].reshape(n, ho, wo, cout)


def bottleneck_forward(x_nchw, params, *, stride):
    # TODO(synk): a production model should stay NHWC end-to-end; these
    # per-block NCHW<->NHWC transposes exist only to match the torch interface.
    x = jnp.transpose(x_nchw, (0, 2, 3, 1))
    out = bottleneck_forward_nhwc(x, params, stride=stride)
    return jnp.transpose(out, (0, 3, 1, 2))


# --------------------------------------------------------------------------
# Pure-JAX references (PyTorch semantics)
# --------------------------------------------------------------------------
def _bn_ref(y, gamma, beta):
    mean = jnp.mean(y, axis=(0, 1, 2), keepdims=True)
    var = jnp.mean(jnp.square(y - mean), axis=(0, 1, 2), keepdims=True)
    return (y - mean) * lax.rsqrt(var + EPS) * gamma.reshape(1, 1, 1, -1) \
        + beta.reshape(1, 1, 1, -1)


def bottleneck_ref(x_nchw, params, *, stride, matmul_dtype=jnp.float32):
    """matmul_dtype=bfloat16 reproduces the kernel's MXU precision (bf16
    operands, f32 accumulation); float32 is the exact full-precision ref."""
    cast = lambda a: a.astype(matmul_dtype)
    x = jnp.transpose(x_nchw, (0, 2, 3, 1)).astype(jnp.float32)
    cin = x.shape[-1]
    cout = params["w3"].shape[1]

    h1 = jnp.einsum("nhwc,cd->nhwd", cast(x), cast(params["w1"]),
                    preferred_element_type=jnp.float32)
    h1 = jax.nn.relu(_bn_ref(h1, params["g1"], params["b1"]))

    h2 = lax.conv_general_dilated(cast(h1), cast(params["w2"]), (stride, stride),
                                  ((1, 1), (1, 1)),
                                  dimension_numbers=("NHWC", "HWIO", "NHWC"),
                                  preferred_element_type=jnp.float32)
    h2 = jax.nn.relu(_bn_ref(h2, params["g2"], params["b2"]))

    y3 = jnp.einsum("nhwc,cd->nhwd", cast(h2), cast(params["w3"]),
                    preferred_element_type=jnp.float32)
    y3 = _bn_ref(y3, params["g3"], params["b3"])

    if stride != 1 or cin != cout:
        s = x[:, ::stride, ::stride, :]
        s = jnp.einsum("nhwc,cd->nhwd", cast(s), cast(params["ws"]),
                       preferred_element_type=jnp.float32)
        s = _bn_ref(s, params["gs"], params["bs"])
    else:
        s = x

    out = jax.nn.relu(y3 + s)
    return jnp.transpose(out, (0, 3, 1, 2))


# --------------------------------------------------------------------------
# Deterministic synthetic parameter initialization
# --------------------------------------------------------------------------
def init_params(key, in_planes, planes, stride):
    ks = jax.random.split(key, 12)

    def w_init(k, shape, fan_in):
        return (jax.random.normal(k, shape, jnp.float32) / np.sqrt(fan_in)).astype(jnp.float32)

    def bn_init(kg, kb, c):
        g = (1.0 + 0.1 * jax.random.normal(kg, (1, c), jnp.float32)).astype(jnp.float32)
        b = (0.1 * jax.random.normal(kb, (1, c), jnp.float32)).astype(jnp.float32)
        return g, b

    p = {}
    p["w1"] = w_init(ks[0], (in_planes, planes), in_planes)          # 1x1 conv as matrix
    p["g1"], p["b1"] = bn_init(ks[1], ks[2], planes)
    p["w2"] = w_init(ks[3], (3, 3, planes, planes), 9 * planes)      # HWIO
    p["g2"], p["b2"] = bn_init(ks[4], ks[5], planes)
    p["w3"] = w_init(ks[6], (planes, EXPANSION * planes), planes)    # 1x1 conv as matrix
    p["g3"], p["b3"] = bn_init(ks[7], ks[8], EXPANSION * planes)
    if stride != 1 or in_planes != EXPANSION * planes:
        p["ws"] = w_init(ks[9], (in_planes, EXPANSION * planes), in_planes)
        p["gs"], p["bs"] = bn_init(ks[10], ks[11], EXPANSION * planes)
    return p


if __name__ == "__main__":
    key = jax.random.PRNGKey(0)
    configs = [
        # exercises projection shortcut (stride=2) and strided 3x3 conv
        dict(in_planes=16, planes=8, stride=2, N=2, H=16, W=16),
        # exercises identity shortcut (stride=1, in_planes == 4*planes)
        dict(in_planes=32, planes=8, stride=1, N=2, H=16, W=16),
    ]
    for cfg in configs:
        key, kx, kp = jax.random.split(key, 3)
        x = jax.random.normal(
            kx, (cfg["N"], cfg["in_planes"], cfg["H"], cfg["W"]), jnp.float32)
        params = init_params(kp, cfg["in_planes"], cfg["planes"], cfg["stride"])

        fwd = jax.jit(functools.partial(bottleneck_forward, stride=cfg["stride"]))
        out = jax.block_until_ready(fwd(x, params))

        # Tight check vs. a reference with matching bf16-operand / f32-acc matmuls.
        ref_bf16 = bottleneck_ref(x, params, stride=cfg["stride"],
                                  matmul_dtype=jnp.bfloat16)
        assert out.shape == ref_bf16.shape, (out.shape, ref_bf16.shape)
        np.testing.assert_allclose(np.asarray(out), np.asarray(ref_bf16),
                                   rtol=1e-3, atol=1e-3)

        # Loose check vs. the full-f32 PyTorch-semantics reference.
        ref_f32 = bottleneck_ref(x, params, stride=cfg["stride"],
                                 matmul_dtype=jnp.float32)
        np.testing.assert_allclose(np.asarray(out), np.asarray(ref_f32),
                                   rtol=3e-2, atol=3e-2)
    print("KERNEL_OK")
</pallas_src>

<mosaic_0001>
module attributes {stable_mosaic.version = 11 : i64} {
  func.func @_mm_stats_kernel(%arg0: i32, %arg1: memref<64x128xbf16, #tpu.memory_space<vmem>>, %arg2: memref<128x128xbf16, #tpu.memory_space<vmem>>, %arg3: memref<64x128xf32, #tpu.memory_space<vmem>>, %arg4: memref<1x2x128xf32, #tpu.memory_space<vmem>>) attributes {dimension_semantics = [#tpu.dimension_semantics<parallel>], iteration_bounds = array<i64: 2>, scalar_prefetch = 0 : i64, scratch_operands = 0 : i64, tpu.core_type = #tpu.core_type<tc>, window_params = [{transform_indices = @transform_0, window_bounds = array<i64: 64, 128>}, {pipeline_mode = #tpu.pipeline_mode<synchronous>, transform_indices = @transform_1, window_bounds = array<i64: 128, 128>}, {transform_indices = @transform_2, window_bounds = array<i64: 64, 128>}, {transform_indices = @transform_3, window_bounds = array<i64: 1, 2, 128>}]} {
    %c0 = arith.constant 0 : index
    %c0_0 = arith.constant 0 : index
    %0 = vector.load %arg1[%c0, %c0_0] : memref<64x128xbf16, #tpu.memory_space<vmem>>, vector<64x128xbf16>
    %c0_1 = arith.constant 0 : index
    %c0_2 = arith.constant 0 : index
    %1 = vector.load %arg2[%c0_1, %c0_2] : memref<128x128xbf16, #tpu.memory_space<vmem>>, vector<128x128xbf16>
    %cst = arith.constant dense<0.000000e+00> : vector<64x128xf32>
    %2 = tpu.matmul %0, %1, %cst {dimension_numbers = #tpu.dot_dimension_numbers<[1], [0], [0], [1], [0, 0, 1, 1], [], []>} : vector<64x128xbf16>, vector<128x128xbf16>, vector<64x128xf32> -> vector<64x128xf32>
    %c0_3 = arith.constant 0 : index
    %c0_4 = arith.constant 0 : index
    %3 = vector.load %arg3[%c0_3, %c0_4] : memref<64x128xf32, #tpu.memory_space<vmem>>, vector<64x128xf32>
    tpu.vector_store %arg3[%c0_3, %c0_4], %2 {strides = array<i32>} : memref<64x128xf32, #tpu.memory_space<vmem>>, vector<64x128xf32>,
    %cst_5 = arith.constant dense<0.000000e+00> : vector<128xf32>
    %4 = vector.multi_reduction <add>, %2, %cst_5 [0] : vector<64x128xf32> to vector<128xf32>
    %5 = vector.shape_cast %4 : vector<128xf32> to vector<1x128xf32>
    %6 = vector.shape_cast %5 : vector<1x128xf32> to vector<1x1x128xf32>
    %c0_6 = arith.constant 0 : index
    %c0_7 = arith.constant 0 : index
    %c0_8 = arith.constant 0 : index
    %7 = vector.load %arg4[%c0_6, %c0_7, %c0_8] : memref<1x2x128xf32, #tpu.memory_space<vmem>>, vector<1x1x128xf32>
    tpu.vector_store %arg4[%c0_6, %c0_7, %c0_8], %6 {strides = array<i32>} : memref<1x2x128xf32, #tpu.memory_space<vmem>>, vector<1x1x128xf32>,
    %8 = arith.mulf %2, %2 : vector<64x128xf32>
    %cst_9 = arith.constant dense<0.000000e+00> : vector<128xf32>
    %9 = vector.multi_reduction <add>, %8, %cst_9 [0] : vector<64x128xf32> to vector<128xf32>
    %10 = vector.shape_cast %9 : vector<128xf32> to vector<1x128xf32>
    %11 = vector.shape_cast %10 : vector<1x128xf32> to vector<1x1x128xf32>
    %c0_10 = arith.constant 0 : index
    %c1 = arith.constant 1 : index
    %c0_11 = arith.constant 0 : index
    %12 = vector.load %arg4[%c0_10, %c1, %c0_11] : memref<1x2x128xf32, #tpu.memory_space<vmem>>, vector<1x1x128xf32>
    tpu.vector_store %arg4[%c0_10, %c1, %c0_11], %11 {strides = array<i32>} : memref<1x2x128xf32, #tpu.memory_space<vmem>>, vector<1x1x128xf32>,
    return
  }
  func.func @transform_0(%arg0: i32) -> (i32, i32) {
    %c0_i32 = arith.constant 0 : i32
    %c0_i32_0 = arith.constant 0 : i32
    return %arg0, %c0_i32 : i32, i32
  }
  func.func @transform_1(%arg0: i32) -> (i32, i32) {
    %c0_i32 = arith.constant 0 : i32
    %c0_i32_0 = arith.constant 0 : i32
    %c0_i32_1 = arith.constant 0 : i32
    return %c0_i32, %c0_i32_0 : i32, i32
  }
  func.func @transform_2(%arg0: i32) -> (i32, i32) {
    %c0_i32 = arith.constant 0 : i32
    %c0_i32_0 = arith.constant 0 : i32
    return %arg0, %c0_i32 : i32, i32
  }
  func.func @transform_3(%arg0: i32) -> (i32, i32, i32) {
    %c0_i32 = arith.constant 0 : i32
    %c0_i32_0 = arith.constant 0 : i32
    %c0_i32_1 = arith.constant 0 : i32
    return %arg0, %c0_i32, %c0_i32_0 : i32, i32, i32
  }
}

module attributes {stable_mosaic.version = 11 : i64} {
  func.func @_mm_stats_kernel(%arg0: i32, %arg1: memref<256x128xbf16, #tpu.memory_space<vmem>>, %arg2: memref<128x128xbf16, #tpu.memory_space<vmem>>, %arg3: memref<256x128xf32, #tpu.memory_space<vmem>>, %arg4: memref<1x2x128xf32, #tpu.memory_space<vmem>>) attributes {dimension_semantics = [#tpu.dimension_semantics<parallel>], iteration_bounds = array<i64: 2>, scalar_prefetch = 0 : i64, scratch_operands = 0 : i64, tpu.core_type = #tpu.core_type<tc>, window_params = [{transform_indices = @transform_0, window_bounds = array<i64: 256, 128>}, {pipeline_mode = #tpu.pipeline_mode<synchronous>, transform_indices = @transform_1, window_bounds = array<i64: 128, 128>}, {transform_indices = @transform_2, window_bounds = array<i64: 256, 128>}, {transform_indices = @transform_3, window_bounds = array<i64: 1, 2, 128>}]} {
    %c0 = arith.constant 0 : index
    %c0_0 = arith.constant 0 : index
    %0 = vector.load %arg1[%c0, %c0_0] : memref<256x128xbf16, #tpu.memory_space<vmem>>, vector<256x128xbf16>
    %c0_1 = arith.constant 0 : index
    %c0_2 = arith.constant 0 : index
    %1 = vector.load %arg2[%c0_1, %c0_2] : memref<128x128xbf16, #tpu.memory_space<vmem>>, vector<128x128xbf16>
    %cst = arith.constant dense<0.000000e+00> : vector<256x128xf32>
    %2 = tpu.matmul %0, %1, %cst {dimension_numbers = #tpu.dot_dimension_numbers<[1], [0], [0], [1], [0, 0, 1, 1], [], []>} : vector<256x128xbf16>, vector<128x128xbf16>, vector<256x128xf32> -> vector<256x128xf32>
    %c0_3 = arith.constant 0 : index
    %c0_4 = arith.constant 0 : index
    %3 = vector.load %arg3[%c0_3, %c0_4] : memref<256x128xf32, #tpu.memory_space<vmem>>, vector<256x128xf32>
    tpu.vector_store %arg3[%c0_3, %c0_4], %2 {strides = array<i32>} : memref<256x128xf32, #tpu.memory_space<vmem>>, vector<256x128xf32>,
    %cst_5 = arith.constant dense<0.000000e+00> : vector<128xf32>
    %4 = vector.multi_reduction <add>, %2, %cst_5 [0] : vector<256x128xf32> to vector<128xf32>
    %5 = vector.shape_cast %4 : vector<128xf32> to vector<1x128xf32>
    %6 = vector.shape_cast %5 : vector<1x128xf32> to vector<1x1x128xf32>
    %c0_6 = arith.constant 0 : index
    %c0_7 = arith.constant 0 : index
    %c0_8 = arith.constant 0 : index
    %7 = vector.load %arg4[%c0_6, %c0_7, %c0_8] : memref<1x2x128xf32, #tpu.memory_space<vmem>>, vector<1x1x128xf32>
    tpu.vector_store %arg4[%c0_6, %c0_7, %c0_8], %6 {strides = array<i32>} : memref<1x2x128xf32, #tpu.memory_space<vmem>>, vector<1x1x128xf32>,
    %8 = arith.mulf %2, %2 : vector<256x128xf32>
    %cst_9 = arith.constant dense<0.000000e+00> : vector<128xf32>
    %9 = vector.multi_reduction <add>, %8, %cst_9 [0] : vector<256x128xf32> to vector<128xf32>
    %10 = vector.shape_cast %9 : vector<128xf32> to vector<1x128xf32>
    %11 = vector.shape_cast %10 : vector<1x128xf32> to vector<1x1x128xf32>
    %c0_10 = arith.constant 0 : index
    %c1 = arith.constant 1 : index
    %c0_11 = arith.constant 0 : index
    %12 = vector.load %arg4[%c0_10, %c1, %c0_11] : memref<1x2x128xf32, #tpu.memory_space<vmem>>, vector<1x1x128xf32>
    tpu.vector_store %arg4[%c0_10, %c1, %c0_11], %11 {strides = array<i32>} : memref<1x2x128xf32, #tpu.memory_space<vmem>>, vector<1x1x128xf32>,
    return
  }
  func.func @transform_0(%arg0: i32) -> (i32, i32) {
    %c0_i32 = arith.constant 0 : i32
    %c0_i32_0 = arith.constant 0 : i32
    return %arg0, %c0_i32 : i32, i32
  }
  func.func @transform_1(%arg0: i32) -> (i32, i32) {
    %c0_i32 = arith.constant 0 : i32
    %c0_i32_0 = arith.constant 0 : i32
    %c0_i32_1 = arith.constant 0 : i32
    return %c0_i32, %c0_i32_0 : i32, i32
  }
  func.func @transform_2(%arg0: i32) -> (i32, i32) {
    %c0_i32 = arith.constant 0 : i32
    %c0_i32_0 = arith.constant 0 : i32
    return %arg0, %c0_i32 : i32, i32
  }
  func.func @transform_3(%arg0: i32) -> (i32, i32, i32) {
    %c0_i32 = arith.constant 0 : i32
    %c0_i32_0 = arith.constant 0 : i32
    %c0_i32_1 = arith.constant 0 : i32
    return %arg0, %c0_i32, %c0_i32_0 : i32, i32, i32
  }
}

module attributes {stable_mosaic.version = 11 : i64} {
  func.func @_conv3x3_kernel(%arg0: i32, %arg1: memref<1x16x16x128xf32, #tpu.memory_space<vmem>>, %arg2: memref<1x128xf32, #tpu.memory_space<vmem>>, %arg3: memref<1x128xf32, #tpu.memory_space<vmem>>, %arg4: memref<3x3x128x128xbf16, #tpu.memory_space<vmem>>, %arg5: memref<64x128xf32, #tpu.memory_space<vmem>>, %arg6: memref<1x2x128xf32, #tpu.memory_space<vmem>>, %arg7: memref<1x18x18x128xf32, #tpu.memory_space<vmem>>) attributes {dimension_semantics = [#tpu.dimension_semantics<parallel>], iteration_bounds = array<i64: 2>, scalar_prefetch = 0 : i64, scratch_operands = 1 : i64, tpu.core_type = #tpu.core_type<tc>, window_params = [{transform_indices = @transform_0, window_bounds = array<i64: 1, 16, 16, 128>}, {pipeline_mode = #tpu.pipeline_mode<synchronous>, transform_indices = @transform_1, window_bounds = array<i64: 1, 128>}, {pipeline_mode = #tpu.pipeline_mode<synchronous>, transform_indices = @transform_2, window_bounds = array<i64: 1, 128>}, {pipeline_mode = #tpu.pipeline_mode<synchronous>, transform_indices = @transform_3, window_bounds = array<i64: 3, 3, 128, 128>}, {transform_indices = @transform_4, window_bounds = array<i64: 64, 128>}, {transform_indices = @transform_5, window_bounds = array<i64: 1, 2, 128>}]} {
    %c0 = arith.constant 0 : index
    %c0_0 = arith.constant 0 : index
    %0 = vector.load %arg2[%c0, %c0_0] : memref<1x128xf32, #tpu.memory_space<vmem>>, vector<1x128xf32>
    %1 = vector.shape_cast %0 : vector<1x128xf32> to vector<1x1x1x128xf32>
    %c0_1 = arith.constant 0 : index
    %c0_2 = arith.constant 0 : index
    %2 = vector.load %arg3[%c0_1, %c0_2] : memref<1x128xf32, #tpu.memory_space<vmem>>, vector<1x128xf32>
    %3 = vector.shape_cast %2 : vector<1x128xf32> to vector<1x1x1x128xf32>
    %c0_3 = arith.constant 0 : index
    %c0_4 = arith.constant 0 : index
    %c0_5 = arith.constant 0 : index
    %c0_6 = arith.constant 0 : index
    %4 = vector.load %arg1[%c0_3, %c0_4, %c0_5, %c0_6] : memref<1x16x16x128xf32, #tpu.memory_space<vmem>>, vector<1x16x16x128xf32>
    %5 = vector.broadcast %1 : vector<1x1x1x128xf32> to vector<1x16x16x128xf32>
    %6 = arith.mulf %4, %5 : vector<1x16x16x128xf32>
    %7 = vector.broadcast %3 : vector<1x1x1x128xf32> to vector<1x16x16x128xf32>
    %8 = arith.addf %6, %7 : vector<1x16x16x128xf32>
    %cst = arith.constant 0.000000e+00 : f32
    %9 = vector.broadcast %cst : f32 to vector<1x16x16x128xf32>
    %10 = arith.maximumf %8, %9 : vector<1x16x16x128xf32>
    %cst_7 = arith.constant 0.000000e+00 : f32
    %11 = vector.broadcast %cst_7 : f32 to vector<1x1x18x128xf32>
    %cst_8 = arith.constant 0.000000e+00 : f32
    %12 = vector.broadcast %cst_8 : f32 to vector<1x18x1x128xf32>
    %c0_9 = arith.constant 0 : index
    %c0_10 = arith.constant 0 : index
    %c0_11 = arith.constant 0 : index
    %c0_12 = arith.constant 0 : index
    %13 = vector.load %arg7[%c0_9, %c0_10, %c0_11, %c0_12] : memref<1x18x18x128xf32, #tpu.memory_space<vmem>>, vector<1x1x18x128xf32>
    tpu.vector_store %arg7[%c0_9, %c0_10, %c0_11, %c0_12], %11 {strides = array<i32>} : memref<1x18x18x128xf32, #tpu.memory_space<vmem>>, vector<1x1x18x128xf32>,
    %c0_13 = arith.constant 0 : index
    %c17 = arith.constant 17 : index
    %c0_14 = arith.constant 0 : index
    %c0_15 = arith.constant 0 : index
    %14 = vector.load %arg7[%c0_13, %c17, %c0_14, %c0_15] : memref<1x18x18x128xf32, #tpu.memory_space<vmem>>, vector<1x1x18x128xf32>
    tpu.vector_store %arg7[%c0_13, %c17, %c0_14, %c0_15], %11 {strides = array<i32>} : memref<1x18x18x128xf32, #tpu.memory_space<vmem>>, vector<1x1x18x128xf32>,
    %c0_16 = arith.constant 0 : index
    %c0_17 = arith.constant 0 : index
    %c0_18 = arith.constant 0 : index
    %c0_19 = arith.constant 0 : index
    %15 = vector.load %arg7[%c0_16, %c0_17, %c0_18, %c0_19] : memref<1x18x18x128xf32, #tpu.memory_space<vmem>>, vector<1x18x1x128xf32>
    tpu.vector_store %arg7[%c0_16, %c0_17, %c0_18, %c0_19], %12 {strides = array<i32>} : memref<1x18x18x128xf32, #tpu.memory_space<vmem>>, vector<1x18x1x128xf32>,
    %c0_20 = arith.constant 0 : index
    %c0_21 = arith.constant 0 : index
    %c17_22 = arith.constant 17 : index
    %c0_23 = arith.constant 0 : index
    %16 = vector.load %arg7[%c0_20, %c0_21, %c17_22, %c0_23] : memref<1x18x18x128xf32, #tpu.memory_space<vmem>>, vector<1x18x1x128xf32>
    tpu.vector_store %arg7[%c0_20, %c0_21, %c17_22, %c0_23], %12 {strides = array<i32>} : memref<1x18x18x128xf32, #tpu.memory_space<vmem>>, vector<1x18x1x128xf32>,
    %c0_24 = arith.constant 0 : index
    %c1 = arith.constant 1 : index
    %c1_25 = arith.constant 1 : index
    %c0_26 = arith.constant 0 : index
    %17 = vector.load %arg7[%c0_24, %c1, %c1_25, %c0_26] : memref<1x18x18x128xf32, #tpu.memory_space<vmem>>, vector<1x16x16x128xf32>
    tpu.vector_store %arg7[%c0_24, %c1, %c1_25, %c0_26], %10 {strides = array<i32>} : memref<1x18x18x128xf32, #tpu.memory_space<vmem>>, vector<1x16x16x128xf32>,
    %c0_27 = arith.constant 0 : index
    %c0_28 = arith.constant 0 : index
    %c0_29 = arith.constant 0 : index
    %c0_30 = arith.constant 0 : index
    %18 = vector.load %arg4[%c0_27, %c0_28, %c0_29, %c0_30] : memref<3x3x128x128xbf16, #tpu.memory_space<vmem>>, vector<3x3x128x128xbf16>
    %c0_31 = arith.constant 0 : index
    %c0_32 = arith.constant 0 : index
    %c0_33 = arith.constant 0 : index
    %c0_34 = arith.constant 0 : index
    %19 = tpu.strided_load %arg7[%c0_31, %c0_32, %c0_33, %c0_34] {strides = array<i32: 1, 2, 2, 1>} : memref<1x18x18x128xf32, #tpu.memory_space<vmem>>, vector<1x8x8x128xf32>
    %20 = vector.shape_cast %19 : vector<1x8x8x128xf32> to vector<64x128xf32>
    %21 = arith.truncf %20 : vector<64x128xf32> to vector<64x128xbf16>
    %22 = vector.extract_strided_slice %18 {offsets = [0, 0, 0, 0], sizes = [1, 1, 128, 128], strides = [1, 1, 1, 1]} : vector<3x3x128x128xbf16> to vector<1x1x128x128xbf16>
    %23 = vector.shape_cast %22 : vector<1x1x128x128xbf16> to vector<128x128xbf16>
    %cst_35 = arith.constant dense<0.000000e+00> : vector<64x128xf32>
    %24 = tpu.matmul %21, %23, %cst_35 {dimension_numbers = #tpu.dot_dimension_numbers<[1], [0], [0], [1], [0, 0, 1, 1], [], []>} : vector<64x128xbf16>, vector<128x128xbf16>, vector<64x128xf32> -> vector<64x128xf32>
    %c0_36 = arith.constant 0 : index
    %c0_37 = arith.constant 0 : index
    %c1_38 = arith.constant 1 : index
    %c0_39 = arith.constant 0 : index
    %25 = tpu.strided_load %arg7[%c0_36, %c0_37, %c1_38, %c0_39] {strides = array<i32: 1, 2, 2, 1>} : memref<1x18x18x128xf32, #tpu.memory_space<vmem>>, vector<1x8x8x128xf32>
    %26 = vector.shape_cast %25 : vector<1x8x8x128xf32> to vector<64x128xf32>
    %27 = arith.truncf %26 : vector<64x128xf32> to vector<64x128xbf16>
    %28 = vector.extract_strided_slice %18 {offsets = [0, 1, 0, 0], sizes = [1, 1, 128, 128], strides = [1, 1, 1, 1]} : vector<3x3x128x128xbf16> to vector<1x1x128x128xbf16>
    %29 = vector.shape_cast %28 : vector<1x1x128x128xbf16> to vector<128x128xbf16>
    %cst_40 = arith.constant dense<0.000000e+00> : vector<64x128xf32>
    %30 = tpu.matmul %27, %29, %cst_40 {dimension_numbers = #tpu.dot_dimension_numbers<[1], [0], [0], [1], [0, 0, 1, 1], [], []>} : vector<64x128xbf16>, vector<128x128xbf16>, vector<64x128xf32> -> vector<64x128xf32>
    %31 = arith.addf %24, %30 : vector<64x128xf32>
    %c0_41 = arith.constant 0 : index
    %c0_42 = arith.constant 0 : index
    %c2 = arith.constant 2 : index
    %c0_43 = arith.constant 0 : index
    %32 = tpu.strided_load %arg7[%c0_41, %c0_42, %c2, %c0_43] {strides = array<i32: 1, 2, 2, 1>} : memref<1x18x18x128xf32, #tpu.memory_space<vmem>>, vector<1x8x8x128xf32>
    %33 = vector.shape_cast %32 : vector<1x8x8x128xf32> to vector<64x128xf32>
    %34 = arith.truncf %33 : vector<64x128xf32> to vector<64x128xbf16>
    %35 = vector.extract_strided_slice %18 {offsets = [0, 2, 0, 0], sizes = [1, 1, 128, 128], strides = [1, 1, 1, 1]} : vector<3x3x128x128xbf16> to vector<1x1x128x128xbf16>
    %36 = vector.shape_cast %35 : vector<1x1x128x128xbf16> to vector<128x128xbf16>
    %cst_44 = arith.constant dense<0.000000e+00> : vector<64x128xf32>
    %37 = tpu.matmul %34, %36, %cst_44 {dimension_numbers = #tpu.dot_dimension_numbers<[1], [0], [0], [1], [0, 0, 1, 1], [], []>} : vector<64x128xbf16>, vector<128x128xbf16>, vector<64x128xf32> -> vector<64x128xf32>
    %38 = arith.addf %31, %37 : vector<64x128xf32>
    %c0_45 = arith.constant 0 : index
    %c1_46 = arith.constant 1 : index
    %c0_47 = arith.constant 0 : index
    %c0_48 = arith.constant 0 : index
    %39 = tpu.strided_load %arg7[%c0_45, %c1_46, %c0_47, %c0_48] {strides = array<i32: 1, 2, 2, 1>} : memref<1x18x18x128xf32, #tpu.memory_space<vmem>>, vector<1x8x8x128xf32>
    %40 = vector.shape_cast %39 : vector<1x8x8x128xf32> to vector<64x128xf32>
    %41 = arith.truncf %40 : vector<64x128xf32> to vector<64x128xbf16>
    %42 = vector.extract_strided_slice %18 {offsets = [1, 0, 0, 0], sizes = [1, 1, 128, 128], strides = [1, 1, 1, 1]} : vector<3x3x128x128xbf16> to vector<1x1x128x128xbf16>
    %43 = vector.shape_cast %42 : vector<1x1x128x128xbf16> to vector<128x128xbf16>
    %cst_49 = arith.constant dense<0.000000e+00> : vector<64x128xf32>
    %44 = tpu.matmul %41, %43, %cst_49 {dimension_numbers = #tpu.dot_dimension_numbers<[1], [0], [0], [1], [0, 0, 1, 1], [], []>} : vector<64x128xbf16>, vector<128x128xbf16>, vector<64x128xf32> -> vector<64x128xf32>
    %45 = arith.addf %38, %44 : vector<64x128xf32>
    %c0_50 = arith.constant 0 : index
    %c1_51 = arith.constant 1 : index
    %c1_52 = arith.constant 1 : index
    %c0_53 = arith.constant 0 : index
    %46 = tpu.strided_load %arg7[%c0_50, %c1_51, %c1_52, %c0_53] {strides = array<i32: 1, 2, 2, 1>} : memref<1x18x18x128xf32, #tpu.memory_space<vmem>>, vector<1x8x8x128xf32>
    %47 = vector.shape_cast %46 : vector<1x8x8x128xf32> to vector<64x128xf32>
    %48 = arith.truncf %47 : vector<64x128xf32> to vector<64x128xbf16>
    %49 = vector.extract_strided_slice %18 {offsets = [1, 1, 0, 0], sizes = [1, 1, 128, 128], strides = [1, 1, 1, 1]} : vector<3x3x128x128xbf16> to vector<1x1x128x128xbf16>
    %50 = vector.shape_cast %49 : vector<1x1x128x128xbf16> to vector<128x128xbf16>
    %cst_54 = arith.constant dense<0.000000e+00> : vector<64x128xf32>
    %51 = tpu.matmul %48, %50, %cst_54 {dimension_numbers = #tpu.dot_dimension_numbers<[1], [0], [0], [1], [0, 0, 1, 1], [], []>} : vector<64x128xbf16>, vector<128x128xbf16>, vector<64x128xf32> -> vector<64x128xf32>
    %52 = arith.addf %45, %51 : vector<64x128xf32>
    %c0_55 = arith.constant 0 : index
    %c1_56 = arith.constant 1 : index
    %c2_57 = arith.constant 2 : index
    %c0_58 = arith.constant 0 : index
    %53 = tpu.strided_load %arg7[%c0_55, %c1_56, %c2_57, %c0_58] {strides = array<i32: 1, 2, 2, 1>} : memref<1x18x18x128xf32, #tpu.memory_space<vmem>>, vector<1x8x8x128xf32>
    %54 = vector.shape_cast %53 : vector<1x8x8x128xf32> to vector<64x128xf32>
    %55 = arith.truncf %54 : vector<64x128xf32> to vector<64x128xbf16>
    %56 = vector.extract_strided_slice %18 {offsets = [1, 2, 0, 0], sizes = [1, 1, 128, 128], strides = [1, 1, 1, 1]} : vector<3x3x128x128xbf16> to vector<1x1x128x128xbf16>
    %57 = vector.shape_cast %56 : vector<1x1x128x128xbf16> to vector<128x128xbf16>
    %cst_59 = arith.constant dense<0.000000e+00> : vector<64x128xf32>
    %58 = tpu.matmul %55, %57, %cst_59 {dimension_numbers = #tpu.dot_dimension_numbers<[1], [0], [0], [1], [0, 0, 1, 1], [], []>} : vector<64x128xbf16>, vector<128x128xbf16>, vector<64x128xf32> -> vector<64x128xf32>
    %59 = arith.addf %52, %58 : vector<64x128xf32>
    %c0_60 = arith.constant 0 : index
    %c2_61 = arith.constant 2 : index
    %c0_62 = arith.constant 0 : index
    %c0_63 = arith.constant 0 : index
    %60 = tpu.strided_load %arg7[%c0_60, %c2_61, %c0_62, %c0_63] {strides = array<i32: 1, 2, 2, 1>} : memref<1x18x18x128xf32, #tpu.memory_space<vmem>>, vector<1x8x8x128xf32>
    %61 = vector.shape_cast %60 : vector<1x8x8x128xf32> to vector<64x128xf32>
    %62 = arith.truncf %61 : vector<64x128xf32> to vector<64x128xbf16>
    %63 = vector.extract_strided_slice %18 {offsets = [2, 0, 0, 0], sizes = [1, 1, 128, 128], strides = [1, 1, 1, 1]} : vector<3x3x128x128xbf16> to vector<1x1x128x128xbf16>
    %64 = vector.shape_cast %63 : vector<1x1x128x128xbf16> to vector<128x128xbf16>
    %cst_64 = arith.constant dense<0.000000e+00> : vector<64x128xf32>
    %65 = tpu.matmul %62, %64, %cst_64 {dimension_numbers = #tpu.dot_dimension_numbers<[1], [0], [0], [1], [0, 0, 1, 1], [], []>} : vector<64x128xbf16>, vector<128x128xbf16>, vector<64x128xf32> -> vector<64x128xf32>
    %66 = arith.addf %59, %65 : vector<64x128xf32>
    %c0_65 = arith.constant 0 : index
    %c2_66 = arith.constant 2 : index
    %c1_67 = arith.constant 1 : index
    %c0_68 = arith.constant 0 : index
    %67 = tpu.strided_load %arg7[%c0_65, %c2_66, %c1_67, %c0_68] {strides = array<i32: 1, 2, 2, 1>} : memref<1x18x18x128xf32, #tpu.memory_space<vmem>>, vector<1x8x8x128xf32>
    %68 = vector.shape_cast %67 : vector<1x8x8x128xf32> to vector<64x128xf32>
    %69 = arith.truncf %68 : vector<64x128xf32> to vector<64x128xbf16>
    %70 = vector.extract_strided_slice %18 {offsets = [2, 1, 0, 0], sizes = [1, 1, 128, 128], strides = [1, 1, 1, 1]} : vector<3x3x128x128xbf16> to vector<1x1x128x128xbf16>
    %71 = vector.shape_cast %70 : vector<1x1x128x128xbf16> to vector<128x128xbf16>
    %cst_69 = arith.constant dense<0.000000e+00> : vector<64x128xf32>
    %72 = tpu.matmul %69, %71, %cst_69 {dimension_numbers = #tpu.dot_dimension_numbers<[1], [0], [0], [1], [0, 0, 1, 1], [], []>} : vector<64x128xbf16>, vector<128x128xbf16>, vector<64x128xf32> -> vector<64x128xf32>
    %73 = arith.addf %66, %72 : vector<64x128xf32>
    %c0_70 = arith.constant 0 : index
    %c2_71 = arith.constant 2 : index
    %c2_72 = arith.constant 2 : index
    %c0_73 = arith.constant 0 : index
    %74 = tpu.strided_load %arg7[%c0_70, %c2_71, %c2_72, %c0_73] {strides = array<i32: 1, 2, 2, 1>} : memref<1x18x18x128xf32, #tpu.memory_space<vmem>>, vector<1x8x8x128xf32>
    %75 = vector.shape_cast %74 : vector<1x8x8x128xf32> to vector<64x128xf32>
    %76 = arith.truncf %75 : vector<64x128xf32> to vector<64x128xbf16>
    %77 = vector.extract_strided_slice %18 {offsets = [2, 2, 0, 0], sizes = [1, 1, 128, 128], strides = [1, 1, 1, 1]} : vector<3x3x128x128xbf16> to vector<1x1x128x128xbf16>
    %78 = vector.shape_cast %77 : vector<1x1x128x128xbf16> to vector<128x128xbf16>
    %cst_74 = arith.constant dense<0.000000e+00> : vector<64x128xf32>
    %79 = tpu.matmul %76, %78, %cst_74 {dimension_numbers = #tpu.dot_dimension_numbers<[1], [0], [0], [1], [0, 0, 1, 1], [], []>} : vector<64x128xbf16>, vector<128x128xbf16>, vector<64x128xf32> -> vector<64x128xf32>
    %80 = arith.addf %73, %79 : vector<64x128xf32>
    %c0_75 = arith.constant 0 : index
    %c0_76 = arith.constant 0 : index
    %81 = vector.load %arg5[%c0_75, %c0_76] : memref<64x128xf32, #tpu.memory_space<vmem>>, vector<64x128xf32>
    tpu.vector_store %arg5[%c0_75, %c0_76], %80 {strides = array<i32>} : memref<64x128xf32, #tpu.memory_space<vmem>>, vector<64x128xf32>,
    %cst_77 = arith.constant dense<0.000000e+00> : vector<128xf32>
    %82 = vector.multi_reduction <add>, %80, %cst_77 [0] : vector<64x128xf32> to vector<128xf32>
    %83 = vector.shape_cast %82 : vector<128xf32> to vector<1x128xf32>
    %84 = vector.shape_cast %83 : vector<1x128xf32> to vector<1x1x128xf32>
    %c0_78 = arith.constant 0 : index
    %c0_79 = arith.constant 0 : index
    %c0_80 = arith.constant 0 : index
    %85 = vector.load %arg6[%c0_78, %c0_79, %c0_80] : memref<1x2x128xf32, #tpu.memory_space<vmem>>, vector<1x1x128xf32>
    tpu.vector_store %arg6[%c0_78, %c0_79, %c0_80], %84 {strides = array<i32>} : memref<1x2x128xf32, #tpu.memory_space<vmem>>, vector<1x1x128xf32>,
    %86 = arith.mulf %80, %80 : vector<64x128xf32>
    %cst_81 = arith.constant dense<0.000000e+00> : vector<128xf32>
    %87 = vector.multi_reduction <add>, %86, %cst_81 [0] : vector<64x128xf32> to vector<128xf32>
    %88 = vector.shape_cast %87 : vector<128xf32> to vector<1x128xf32>
    %89 = vector.shape_cast %88 : vector<1x128xf32> to vector<1x1x128xf32>
    %c0_82 = arith.constant 0 : index
    %c1_83 = arith.constant 1 : index
    %c0_84 = arith.constant 0 : index
    %90 = vector.load %arg6[%c0_82, %c1_83, %c0_84] : memref<1x2x128xf32, #tpu.memory_space<vmem>>, vector<1x1x128xf32>
    tpu.vector_store %arg6[%c0_82, %c1_83, %c0_84], %89 {strides = array<i32>} : memref<1x2x128xf32, #tpu.memory_space<vmem>>, vector<1x1x128xf32>,
    return
  }
  func.func @transform_0(%arg0: i32) -> (i32, i32, i32, i32) {
    %c0_i32 = arith.constant 0 : i32
    %c0_i32_0 = arith.constant 0 : i32
    %c0_i32_1 = arith.constant 0 : i32
    %c0_i32_2 = arith.constant 0 : i32
    return %arg0, %c0_i32, %c0_i32_0, %c0_i32_1 : i32, i32, i32, i32
  }
  func.func @transform_1(%arg0: i32) -> (i32, i32) {
    %c0_i32 = arith.constant 0 : i32
    %c0_i32_0 = arith.constant 0 : i32
    %c0_i32_1 = arith.constant 0 : i32
    return %c0_i32, %c0_i32_0 : i32, i32
  }
  func.func @transform_2(%arg0: i32) -> (i32, i32) {
    %c0_i32 = arith.constant 0 : i32
    %c0_i32_0 = arith.constant 0 : i32
    %c0_i32_1 = arith.constant 0 : i32
    return %c0_i32, %c0_i32_0 : i32, i32
  }
  func.func @transform_3(%arg0: i32) -> (i32, i32, i32, i32) {
    %c0_i32 = arith.constant 0 : i32
    %c0_i32_0 = arith.constant 0 : i32
    %c0_i32_1 = arith.constant 0 : i32
    %c0_i32_2 = arith.constant 0 : i32
    %c0_i32_3 = arith.constant 0 : i32
    return %c0_i32, %c0_i32_0, %c0_i32_1, %c0_i32_2 : i32, i32, i32, i32
  }
  func.func @transform_4(%arg0: i32) -> (i32, i32) {
    %c0_i32 = arith.constant 0 : i32
    %c0_i32_0 = arith.constant 0 : i32
    return %arg0, %c0_i32 : i32, i32
  }
  func.func @transform_5(%arg0: i32) -> (i32, i32, i32) {
    %c0_i32 = arith.constant 0 : i32
    %c0_i32_0 = arith.constant 0 : i32
    %c0_i32_1 = arith.constant 0 : i32
    return %arg0, %c0_i32, %c0_i32_0 : i32, i32, i32
  }
}

module attributes {stable_mosaic.version = 11 : i64} {
  func.func @_bn_mm_stats_kernel(%arg0: i32, %arg1: memref<64x128xf32, #tpu.memory_space<vmem>>, %arg2: memref<1x128xf32, #tpu.memory_space<vmem>>, %arg3: memref<1x128xf32, #tpu.memory_space<vmem>>, %arg4: memref<128x128xbf16, #tpu.memory_space<vmem>>, %arg5: memref<64x128xf32, #tpu.memory_space<vmem>>, %arg6: memref<1x2x128xf32, #tpu.memory_space<vmem>>) attributes {dimension_semantics = [#tpu.dimension_semantics<parallel>], iteration_bounds = array<i64: 2>, scalar_prefetch = 0 : i64, scratch_operands = 0 : i64, tpu.core_type = #tpu.core_type<tc>, window_params = [{transform_indices = @transform_0, window_bounds = array<i64: 64, 128>}, {pipeline_mode = #tpu.pipeline_mode<synchronous>, transform_indices = @transform_1, window_bounds = array<i64: 1, 128>}, {pipeline_mode = #tpu.pipeline_mode<synchronous>, transform_indices = @transform_2, window_bounds = array<i64: 1, 128>}, {pipeline_mode = #tpu.pipeline_mode<synchronous>, transform_indices = @transform_3, window_bounds = array<i64: 128, 128>}, {transform_indices = @transform_4, window_bounds = array<i64: 64, 128>}, {transform_indices = @transform_5, window_bounds = array<i64: 1, 2, 128>}]} {
    %c0 = arith.constant 0 : index
    %c0_0 = arith.constant 0 : index
    %0 = vector.load %arg1[%c0, %c0_0] : memref<64x128xf32, #tpu.memory_space<vmem>>, vector<64x128xf32>
    %c0_1 = arith.constant 0 : index
    %c0_2 = arith.constant 0 : index
    %1 = vector.load %arg2[%c0_1, %c0_2] : memref<1x128xf32, #tpu.memory_space<vmem>>, vector<1x128xf32>
    %2 = vector.broadcast %1 : vector<1x128xf32> to vector<64x128xf32>
    %3 = arith.mulf %0, %2 : vector<64x128xf32>
    %c0_3 = arith.constant 0 : index
    %c0_4 = arith.constant 0 : index
    %4 = vector.load %arg3[%c0_3, %c0_4] : memref<1x128xf32, #tpu.memory_space<vmem>>, vector<1x128xf32>
    %5 = vector.broadcast %4 : vector<1x128xf32> to vector<64x128xf32>
    %6 = arith.addf %3, %5 : vector<64x128xf32>
    %cst = arith.constant 0.000000e+00 : f32
    %7 = vector.broadcast %cst : f32 to vector<64x128xf32>
    %8 = arith.maximumf %6, %7 : vector<64x128xf32>
    %9 = arith.truncf %8 : vector<64x128xf32> to vector<64x128xbf16>
    %c0_5 = arith.constant 0 : index
    %c0_6 = arith.constant 0 : index
    %10 = vector.load %arg4[%c0_5, %c0_6] : memref<128x128xbf16, #tpu.memory_space<vmem>>, vector<128x128xbf16>
    %cst_7 = arith.constant dense<0.000000e+00> : vector<64x128xf32>
    %11 = tpu.matmul %9, %10, %cst_7 {dimension_numbers = #tpu.dot_dimension_numbers<[1], [0], [0], [1], [0, 0, 1, 1], [], []>} : vector<64x128xbf16>, vector<128x128xbf16>, vector<64x128xf32> -> vector<64x128xf32>
    %c0_8 = arith.constant 0 : index
    %c0_9 = arith.constant 0 : index
    %12 = vector.load %arg5[%c0_8, %c0_9] : memref<64x128xf32, #tpu.memory_space<vmem>>, vector<64x128xf32>
    tpu.vector_store %arg5[%c0_8, %c0_9], %11 {strides = array<i32>} : memref<64x128xf32, #tpu.memory_space<vmem>>, vector<64x128xf32>,
    %cst_10 = arith.constant dense<0.000000e+00> : vector<128xf32>
    %13 = vector.multi_reduction <add>, %11, %cst_10 [0] : vector<64x128xf32> to vector<128xf32>
    %14 = vector.shape_cast %13 : vector<128xf32> to vector<1x128xf32>
    %15 = vector.shape_cast %14 : vector<1x128xf32> to vector<1x1x128xf32>
    %c0_11 = arith.constant 0 : index
    %c0_12 = arith.constant 0 : index
    %c0_13 = arith.constant 0 : index
    %16 = vector.load %arg6[%c0_11, %c0_12, %c0_13] : memref<1x2x128xf32, #tpu.memory_space<vmem>>, vector<1x1x128xf32>
    tpu.vector_store %arg6[%c0_11, %c0_12, %c0_13], %15 {strides = array<i32>} : memref<1x2x128xf32, #tpu.memory_space<vmem>>, vector<1x1x128xf32>,
    %17 = arith.mulf %11, %11 : vector<64x128xf32>
    %cst_14 = arith.constant dense<0.000000e+00> : vector<128xf32>
    %18 = vector.multi_reduction <add>, %17, %cst_14 [0] : vector<64x128xf32> to vector<128xf32>
    %19 = vector.shape_cast %18 : vector<128xf32> to vector<1x128xf32>
    %20 = vector.shape_cast %19 : vector<1x128xf32> to vector<1x1x128xf32>
    %c0_15 = arith.constant 0 : index
    %c1 = arith.constant 1 : index
    %c0_16 = arith.constant 0 : index
    %21 = vector.load %arg6[%c0_15, %c1, %c0_16] : memref<1x2x128xf32, #tpu.memory_space<vmem>>, vector<1x1x128xf32>
    tpu.vector_store %arg6[%c0_15, %c1, %c0_16], %20 {strides = array<i32>} : memref<1x2x128xf32, #tpu.memory_space<vmem>>, vector<1x1x128xf32>,
    return
  }
  func.func @transform_0(%arg0: i32) -> (i32, i32) {
    %c0_i32 = arith.constant 0 : i32
    %c0_i32_0 = arith.constant 0 : i32
    return %arg0, %c0_i32 : i32, i32
  }
  func.func @transform_1(%arg0: i32) -> (i32, i32) {
    %c0_i32 = arith.constant 0 : i32
    %c0_i32_0 = arith.constant 0 : i32
    %c0_i32_1 = arith.constant 0 : i32
    return %c0_i32, %c0_i32_0 : i32, i32
  }
  func.func @transform_2(%arg0: i32) -> (i32, i32) {
    %c0_i32 = arith.constant 0 : i32
    %c0_i32_0 = arith.constant 0 : i32
    %c0_i32_1 = arith.constant 0 : i32
    return %c0_i32, %c0_i32_0 : i32, i32
  }
  func.func @transform_3(%arg0: i32) -> (i32, i32) {
    %c0_i32 = arith.constant 0 : i32
    %c0_i32_0 = arith.constant 0 : i32
    %c0_i32_1 = arith.constant 0 : i32
    return %c0_i32, %c0_i32_0 : i32, i32
  }
  func.func @transform_4(%arg0: i32) -> (i32, i32) {
    %c0_i32 = arith.constant 0 : i32
    %c0_i32_0 = arith.constant 0 : i32
    return %arg0, %c0_i32 : i32, i32
  }
  func.func @transform_5(%arg0: i32) -> (i32, i32, i32) {
    %c0_i32 = arith.constant 0 : i32
    %c0_i32_0 = arith.constant 0 : i32
    %c0_i32_1 = arith.constant 0 : i32
    return %arg0, %c0_i32, %c0_i32_0 : i32, i32, i32
  }
}

module attributes {stable_mosaic.version = 11 : i64} {
  func.func @_residual_kernel(%arg0: i32, %arg1: memref<64x128xf32, #tpu.memory_space<vmem>>, %arg2: memref<1x128xf32, #tpu.memory_space<vmem>>, %arg3: memref<1x128xf32, #tpu.memory_space<vmem>>, %arg4: memref<64x128xf32, #tpu.memory_space<vmem>>, %arg5: memref<1x128xf32, #tpu.memory_space<vmem>>, %arg6: memref<1x128xf32, #tpu.memory_space<vmem>>, %arg7: memref<64x128xf32, #tpu.memory_space<vmem>>) attributes {dimension_semantics = [#tpu.dimension_semantics<parallel>], iteration_bounds = array<i64: 2>, scalar_prefetch = 0 : i64, scratch_operands = 0 : i64, tpu.core_type = #tpu.core_type<tc>, window_params = [{transform_indices = @transform_0, window_bounds = array<i64: 64, 128>}, {pipeline_mode = #tpu.pipeline_mode<synchronous>, transform_indices = @transform_1, window_bounds = array<i64: 1, 128>}, {pipeline_mode = #tpu.pipeline_mode<synchronous>, transform_indices = @transform_2, window_bounds = array<i64: 1, 128>}, {transform_indices = @transform_3, window_bounds = array<i64: 64, 128>}, {pipeline_mode = #tpu.pipeline_mode<synchronous>, transform_indices = @transform_4, window_bounds = array<i64: 1, 128>}, {pipeline_mode = #tpu.pipeline_mode<synchronous>, transform_indices = @transform_5, window_bounds = array<i64: 1, 128>}, {transform_indices = @transform_6, window_bounds = array<i64: 64, 128>}]} {
    %c0 = arith.constant 0 : index
    %c0_0 = arith.constant 0 : index
    %0 = vector.load %arg1[%c0, %c0_0] : memref<64x128xf32, #tpu.memory_space<vmem>>, vector<64x128xf32>
    %c0_1 = arith.constant 0 : index
    %c0_2 = arith.constant 0 : index
    %1 = vector.load %arg2[%c0_1, %c0_2] : memref<1x128xf32, #tpu.memory_space<vmem>>, vector<1x128xf32>
    %2 = vector.broadcast %1 : vector<1x128xf32> to vector<64x128xf32>
    %3 = arith.mulf %0, %2 : vector<64x128xf32>
    %c0_3 = arith.constant 0 : index
    %c0_4 = arith.constant 0 : index
    %4 = vector.load %arg3[%c0_3, %c0_4] : memref<1x128xf32, #tpu.memory_space<vmem>>, vector<1x128xf32>
    %5 = vector.broadcast %4 : vector<1x128xf32> to vector<64x128xf32>
    %6 = arith.addf %3, %5 : vector<64x128xf32>
    %c0_5 = arith.constant 0 : index
    %c0_6 = arith.constant 0 : index
    %7 = vector.load %arg4[%c0_5, %c0_6] : memref<64x128xf32, #tpu.memory_space<vmem>>, vector<64x128xf32>
    %c0_7 = arith.constant 0 : index
    %c0_8 = arith.constant 0 : index
    %8 = vector.load %arg5[%c0_7, %c0_8] : memref<1x128xf32, #tpu.memory_space<vmem>>, vector<1x128xf32>
    %9 = vector.broadcast %8 : vector<1x128xf32> to vector<64x128xf32>
    %10 = arith.mulf %7, %9 : vector<64x128xf32>
    %c0_9 = arith.constant 0 : index
    %c0_10 = arith.constant 0 : index
    %11 = vector.load %arg6[%c0_9, %c0_10] : memref<1x128xf32, #tpu.memory_space<vmem>>, vector<1x128xf32>
    %12 = vector.broadcast %11 : vector<1x128xf32> to vector<64x128xf32>
    %13 = arith.addf %10, %12 : vector<64x128xf32>
    %14 = arith.addf %6, %13 : vector<64x128xf32>
    %cst = arith.constant 0.000000e+00 : f32
    %15 = vector.broadcast %cst : f32 to vector<64x128xf32>
    %16 = arith.maximumf %14, %15 : vector<64x128xf32>
    %c0_11 = arith.constant 0 : index
    %c0_12 = arith.constant 0 : index
    %17 = vector.load %arg7[%c0_11, %c0_12] : memref<64x128xf32, #tpu.memory_space<vmem>>, vector<64x128xf32>
    tpu.vector_store %arg7[%c0_11, %c0_12], %16 {strides = array<i32>} : memref<64x128xf32, #tpu.memory_space<vmem>>, vector<64x128xf32>,
    return
  }
  func.func @transform_0(%arg0: i32) -> (i32, i32) {
    %c0_i32 = arith.constant 0 : i32
    %c0_i32_0 = arith.constant 0 : i32
    return %arg0, %c0_i32 : i32, i32
  }
  func.func @transform_1(%arg0: i32) -> (i32, i32) {
    %c0_i32 = arith.constant 0 : i32
    %c0_i32_0 = arith.constant 0 : i32
    %c0_i32_1 = arith.constant 0 : i32
    return %c0_i32, %c0_i32_0 : i32, i32
  }
  func.func @transform_2(%arg0: i32) -> (i32, i32) {
    %c0_i32 = arith.constant 0 : i32
    %c0_i32_0 = arith.constant 0 : i32
    %c0_i32_1 = arith.constant 0 : i32
    return %c0_i32, %c0_i32_0 : i32, i32
  }
  func.func @transform_3(%arg0: i32) -> (i32, i32) {
    %c0_i32 = arith.constant 0 : i32
    %c0_i32_0 = arith.constant 0 : i32
    return %arg0, %c0_i32 : i32, i32
  }
  func.func @transform_4(%arg0: i32) -> (i32, i32) {
    %c0_i32 = arith.constant 0 : i32
    %c0_i32_0 = arith.constant 0 : i32
    %c0_i32_1 = arith.constant 0 : i32
    return %c0_i32, %c0_i32_0 : i32, i32
  }
  func.func @transform_5(%arg0: i32) -> (i32, i32) {
    %c0_i32 = arith.constant 0 : i32
    %c0_i32_0 = arith.constant 0 : i32
    %c0_i32_1 = arith.constant 0 : i32
    return %c0_i32, %c0_i32_0 : i32, i32
  }
  func.func @transform_6(%arg0: i32) -> (i32, i32) {
    %c0_i32 = arith.constant 0 : i32
    %c0_i32_0 = arith.constant 0 : i32
    return %arg0, %c0_i32 : i32, i32
  }
}

</mosaic_0001>

<bundles_post_ra>
// kernel: bottleneck_forward.8
= control target key start
LH: loop header
LB: loop body
LE: loop exit
PB: predicated region body
PF: predicated region fallthrough
CT: control target
= control target key end

     0   :  { %s602_s12 = smov 0   ;;  %s661_s0 = inlined_call_operand.vmem [shape: bf16[128,128], index: 0, kind: input, shape index: {}]   ;;  %s662_s1 = inlined_call_operand.vmem [shape: bf16[128,128], index: 1, kind: input, shape index: {}]   ;;  %s663_s2 = inlined_call_operand.vmem [shape: f32[128,128], index: 2, kind: output, shape index: {0}]   ;;  %s664_s3 = inlined_call_operand.vmem [shape: f32[2,2,128], index: 3, kind: output, shape index: {1}]  }
   0x1 LB: > { %s608_s13 = sadd.s32 4294967295, %s580_s12   ;;  %p482_p0 = scmp.ge.s32.totalorder %s580_s12, 1  ;;  %s580_s12 = sphi %s602_s12, %s14_s12  }
   0x2   : > { %p141_p1 = scmp.lt.s32.totalorder %s580_s12, 3 }
   0x4   : > { %p142_p2 = pnand %p482_p0, %p141_p1 }
   0x5   : > { %v562_v0 = vld [vmem:[%s662_s1] sm:$0xff] (!%p142_p2)   ;;  %s483_s16 = sshll.u32 (!%p142_p2), %s608_s13, 3  ;;  %v563_v1 = vld [vmem:[%s662_s1 + $0x8] sm:$0xff] (!%p142_p2)   ;;  %v564_v2 = vld [vmem:[%s662_s1 + $0x10] sm:$0xff] (!%p142_p2)   ;;  %p181_p4 = scmp.lt.s32.totalorder (!%p142_p2), %s608_s13, 1 }
   0x6   : > { %145 = sbr.rel (%p142_p2) target bundleno = 282 (0x11a), region = 28  ;;  %p170_p3 = scmp.lt.s32.totalorder (!%p142_p2), %s483_s16, 15  ;;  %514 = vmatprep.subr.bf16.mxu0 (!%p142_p2), %v562_v0  ;;  %538 = vmatprep.subr.bf16.mxu1 (!%p142_p2), %v562_v0  ;;  %v565_v3 = vld [vmem:[%s662_s1 + $0x18] sm:$0xff] (!%p142_p2)   ;;  %v566_v6 = vld [vmem:[%s662_s1 + $0x20] sm:$0xff] (!%p142_p2)   ;;  %v567_v7 = vld [vmem:[%s662_s1 + $0x28] sm:$0xff] (!%p142_p2)  }
   0x7   : > { %515 = vmatpush3.bf16.msra.mxu0 (!%p142_p2), %v562_v0  ;;  %546 = vmatpush3.bf16.msra.mxu1 (!%p142_p2), %v562_v0  ;;  %v568_v8 = vld [vmem:[%s662_s1 + $0x30] sm:$0xff] (!%p142_p2)   ;;  %v569_v9 = vld [vmem:[%s662_s1 + $0x38] sm:$0xff] (!%p142_p2)  }
   0x8   : > { %516 = vmatprep.subr.bf16.mxu0 (!%p142_p2), %v563_v1  ;;  %539 = vmatprep.subr.bf16.mxu1 (!%p142_p2), %v563_v1 }
   0xb   : > { %517 = vmatpush3.bf16.msra.mxu0 (!%p142_p2), %v563_v1  ;;  %547 = vmatpush3.bf16.msra.mxu1 (!%p142_p2), %v563_v1 }
   0xc   : > { %518 = vmatprep.subr.bf16.mxu0 (!%p142_p2), %v564_v2  ;;  %540 = vmatprep.subr.bf16.mxu1 (!%p142_p2), %v564_v2 }
   0xd   : > { %s666_s16 = smov (!%p170_p3, %s483_s16), 15  ;;  %s668_s13 = smov (!%p181_p4, %s608_s13), 1 }
   0xe   : > { %s484_s21 = sshll.u32 %s666_s16, 2  ;;  %s486_s8 = sshll.u32 %s666_s16, 3 }
   0xf   : > { %s628_s24 = scalar_lea.vmem %s661_s0, %s484_s21  ;;  %519 = vmatpush3.bf16.msra.mxu0 %v564_v2  ;;  %548 = vmatpush3.bf16.msra.mxu1 %v564_v2  ;;  %s179_s11 = scalar_lea.vmem %s663_s2, %s486_s8 }
  0x10   : > { %v570_v4 = vld [vmem:[%s628_s24] sm:$0xff]   ;;  %v572_v5 = vld [vmem:[%s628_s24 + $0x10] sm:$0xff]   ;;  %520 = vmatprep.subr.bf16.mxu0 %v565_v3  ;;  %541 = vmatprep.subr.bf16.mxu1 %v565_v3  ;;  %v571_v10 = vld [vmem:[%s628_s24 + $0x8] sm:$0xff]   ;;  %s487_s14 = sshll.u32 %s668_s13, 1 }
  0x11   : > { %530 = vmatprep.mubr.bf16.mxu0 %v570_v4  ;;  %534 = vmatprep.mubr.bf16.mxu1 %v572_v5  ;;  %v573_v11 = vld [vmem:[%s628_s24 + $0x18] sm:$0xff]   ;;  %s184_s17 = scalar_lea.vmem %s664_s3, %s487_s14 }
  0x13   : > { %521 = vmatpush3.bf16.msra.mxu0 %v565_v3  ;;  %549 = vmatpush3.bf16.msra.mxu1 %v565_v3 }
  0x14   : > { %522 = vmatprep.subr.bf16.mxu0 %v566_v6  ;;  %542 = vmatprep.subr.bf16.mxu1 %v566_v6 }
  0x17   : > { %523 = vmatpush3.bf16.msra.mxu0 %v566_v6  ;;  %550 = vmatpush3.bf16.msra.mxu1 %v566_v6 }
  0x18   : > { %524 = vmatprep.subr.bf16.mxu0 %v567_v7  ;;  %543 = vmatprep.subr.bf16.mxu1 %v567_v7 }
  0x1b   : > { %525 = vmatpush3.bf16.msra.mxu0 %v567_v7  ;;  %551 = vmatpush3.bf16.msra.mxu1 %v567_v7 }
  0x1c   : > { %526 = vmatprep.subr.bf16.mxu0 %v568_v8  ;;  %544 = vmatprep.subr.bf16.mxu1 %v568_v8 }
  0x1f   : > { %527 = vmatpush3.bf16.msra.mxu0 %v568_v8  ;;  %552 = vmatpush3.bf16.msra.mxu1 %v568_v8 }
  0x20   : > { %528 = vmatprep.subr.bf16.mxu0 %v569_v9  ;;  %545 = vmatprep.subr.bf16.mxu1 %v569_v9 }
  0x23   : > { %529 = vmatpush3.bf16.msra.mxu0 %v569_v9  ;;  %553 = vmatpush3.bf16.msra.mxu1 %v569_v9 }
  0x26   : > { %531 = vmatmul.mubr.bf16.vlgmr.msra.gmra.mrb[0].mxu0 %v571_v10  ;;  %535 = vmatmul.mubr.bf16.vlgmr.msra.gmra.mrb[0].mxu1 %v573_v11 }
  0xf9   : > { %v532_v12 = vpop.f32.mrb[0].mxu0  ;;  %v536_v13 = vpop.f32.mrb[0].mxu1 }
  0xfa   : > { %349 = vst [vmem:[%s179_s11 + $0x10] sm:$0xff] %v532_v12  ;;  %v316_v14 = vpop.f32.mrb[1].mxu0  ;;  %353 = vst [vmem:[%s179_s11 + $0x30] sm:$0xff] %v536_v13  ;;  %v332_v15 = vpop.f32.mrb[1].mxu1  ;;  %v371_v23 = vmul.f32 %v532_v12, %v532_v12  ;;  %v375_v35 = vmul.f32 %v536_v13, %v536_v13 }
  0xfb   : > { %347 = vst [vmem:[%s179_s11] sm:$0xff] %v316_v14  ;;  %v533_v16 = vpop.f32.mrb[2].mxu0  ;;  %351 = vst [vmem:[%s179_s11 + $0x20] sm:$0xff] %v332_v15  ;;  %v537_v17 = vpop.f32.mrb[2].mxu1  ;;  %v369_v20 = vmul.f32 %v316_v14, %v316_v14  ;;  %v373_v29 = vmul.f32 %v332_v15, %v332_v15 }
  0xfc   : > { %350 = vst [vmem:[%s179_s11 + $0x18] sm:$0xff] %v533_v16  ;;  %v319_v18 = vpop.f32.mrb[3].mxu0  ;;  %354 = vst [vmem:[%s179_s11 + $0x38] sm:$0xff] %v537_v17  ;;  %v335_v19 = vpop.f32.mrb[3].mxu1  ;;  %v372_v26 = vmul.f32 %v533_v16, %v533_v16  ;;  %v376_v38 = vmul.f32 %v537_v17, %v537_v17 }
  0xfd   : > { %348 = vst [vmem:[%s179_s11 + $0x8] sm:$0xff] %v319_v18  ;;  %v355_v21 = vadd.f32 %v319_v18, %v316_v14  ;;  %v370_v22 = vmul.f32 %v319_v18, %v319_v18  ;;  %352 = vst [vmem:[%s179_s11 + $0x28] sm:$0xff] %v335_v19  ;;  %v374_v34 = vmul.f32 %v335_v19, %v335_v19 }
  0xff   : > { %v356_v24 = vadd.f32 %v532_v12, %v355_v21  ;;  %v377_v25 = vadd.f32 %v370_v22, %v369_v20 }
 0x101   : > { %v378_v27 = vadd.f32 %v377_v25, %v371_v23  ;;  %v357_v28 = vadd.f32 %v533_v16, %v356_v24 }
 0x103   : > { %v358_v30 = vadd.f32 %v357_v28, %v332_v15  ;;  %v379_v31 = vadd.f32 %v378_v27, %v372_v26 }
 0x105   : > { %v380_v32 = vadd.f32 %v379_v31, %v373_v29  ;;  %v359_v33 = vadd.f32 %v358_v30, %v335_v19 }
 0x107   : > { %v360_v36 = vadd.f32 %v536_v13, %v359_v33  ;;  %v381_v37 = vadd.f32 %v380_v32, %v374_v34 }
 0x109   : > { %v361_v39 = vadd.f32 %v537_v17, %v360_v36  ;;  %v382_v40 = vadd.f32 %v381_v37, %v375_v35 }
 0x10b   : > { %v362_v41 = vrot.slane %v361_v39, 4  ;;  %v383_v42 = vadd.f32 %v382_v40, %v376_v38 }
 0x10d   : > { %v363_v43 = vadd.f32 %v362_v41, %v361_v39  ;;  %v384_v44 = vrot.slane %v383_v42, 4 }
 0x10f   : > { %v364_v45 = vrot.slane %v363_v43, 2  ;;  %v385_v46 = vadd.f32 %v384_v44, %v383_v42 }
 0x111   : > { %v365_v47 = vadd.f32 %v364_v45, %v363_v43  ;;  %v386_v48 = vrot.slane %v385_v46, 2 }
 0x113   : > { %v366_v49 = vrot.slane %v365_v47, 1  ;;  %v387_v50 = vadd.f32 %v386_v48, %v385_v46 }
 0x115   : > { %v367_v51 = vadd.f32 %v366_v49, %v365_v47  ;;  %v388_v52 = vrot.slane %v387_v50, 1 }
 0x117   : > { %368 = vst [vmem:[%s184_s17] sm:$0x1] %v367_v51  ;;  %v389_v53 = vadd.f32 %v388_v52, %v387_v50 }
 0x119   : > { %390 = vst [vmem:[%s184_s17 + $0x1] sm:$0x1] %v389_v53 }
 0x11a PF: > { %s14_s12 = sadd.s32 1, %s580_s12  }
 0x11b   : > { %p11_p5 = scmp.ge.s32.totalorder %s14_s12, 4  }
 0x11d   :  { %13 = sbr.rel (!%p11_p5) target bundleno = 1 (0x1), region = 70 }

// kernel: bottleneck_forward.5
= control target key start
LH: loop header
LB: loop body
LE: loop exit
PB: predicated region body
PF: predicated region fallthrough
CT: control target
= control target key end

     0   :  { %s950_s12 = smov 0   ;;  %s1139_s0 = inlined_call_operand.vmem [shape: bf16[512,128], index: 0, kind: input, shape index: {}]   ;;  %s1140_s1 = inlined_call_operand.vmem [shape: bf16[128,128], index: 1, kind: input, shape index: {}]   ;;  %s1141_s2 = inlined_call_operand.vmem [shape: f32[512,128], index: 2, kind: output, shape index: {0}]   ;;  %s1142_s3 = inlined_call_operand.vmem [shape: f32[2,2,128], index: 3, kind: output, shape index: {1}]  }
   0x1 LB: > { %s956_s13 = sadd.s32 4294967295, %s928_s12   ;;  %p770_p0 = scmp.ge.s32.totalorder %s928_s12, 1  ;;  %s928_s12 = sphi %s950_s12, %s14_s12  }
   0x2   : > { %p141_p1 = scmp.lt.s32.totalorder %s928_s12, 3 }
   0x4   : > { %p142_p2 = pnand %p770_p0, %p141_p1 }
   0x5   : > { %v898_v0 = vld [vmem:[%s1140_s1] sm:$0xff] (!%p142_p2)   ;;  %s771_s16 = sshll.u32 (!%p142_p2), %s956_s13, 5  ;;  %v899_v1 = vld [vmem:[%s1140_s1 + $0x8] sm:$0xff] (!%p142_p2)   ;;  %v900_v2 = vld [vmem:[%s1140_s1 + $0x10] sm:$0xff] (!%p142_p2)   ;;  %p181_p4 = scmp.lt.s32.totalorder (!%p142_p2), %s956_s13, 1 }
   0x6   : > { %145 = sbr.rel (%p142_p2) target bundleno = 330 (0x14a), region = 28  ;;  %p170_p3 = scmp.lt.s32.totalorder (!%p142_p2), %s771_s16, 63  ;;  %826 = vmatprep.subr.bf16.mxu0 (!%p142_p2), %v898_v0  ;;  %874 = vmatprep.subr.bf16.mxu1 (!%p142_p2), %v898_v0  ;;  %v901_v3 = vld [vmem:[%s1140_s1 + $0x18] sm:$0xff] (!%p142_p2)   ;;  %v902_v5 = vld [vmem:[%s1140_s1 + $0x20] sm:$0xff] (!%p142_p2)   ;;  %v903_v6 = vld [vmem:[%s1140_s1 + $0x28] sm:$0xff] (!%p142_p2)  }
   0x7   : > { %827 = vmatpush3.bf16.msra.mxu0 (!%p142_p2), %v898_v0  ;;  %882 = vmatpush3.bf16.msra.mxu1 (!%p142_p2), %v898_v0  ;;  %v904_v8 = vld [vmem:[%s1140_s1 + $0x30] sm:$0xff] (!%p142_p2)   ;;  %v905_v9 = vld [vmem:[%s1140_s1 + $0x38] sm:$0xff] (!%p142_p2)  }
   0x8   : > { %828 = vmatprep.subr.bf16.mxu0 (!%p142_p2), %v899_v1  ;;  %875 = vmatprep.subr.bf16.mxu1 (!%p142_p2), %v899_v1 }
   0xb   : > { %829 = vmatpush3.bf16.msra.mxu0 (!%p142_p2), %v899_v1  ;;  %883 = vmatpush3.bf16.msra.mxu1 (!%p142_p2), %v899_v1 }
   0xc   : > { %830 = vmatprep.subr.bf16.mxu0 (!%p142_p2), %v900_v2  ;;  %876 = vmatprep.subr.bf16.mxu1 (!%p142_p2), %v900_v2 }
   0xd   : > { %s1144_s16 = smov (!%p170_p3, %s771_s16), 63  ;;  %s1146_s13 = smov (!%p181_p4, %s956_s13), 1 }
   0xe   : > { %s772_s21 = sshll.u32 %s1144_s16, 2  ;;  %s774_s8 = sshll.u32 %s1144_s16, 3 }
   0xf   : > { %s976_s24 = scalar_lea.vmem %s1139_s0, %s772_s21  ;;  %831 = vmatpush3.bf16.msra.mxu0 %v900_v2  ;;  %884 = vmatpush3.bf16.msra.mxu1 %v900_v2  ;;  %s1013_s11 = scalar_lea.vmem %s1141_s2, %s774_s8 }
  0x10   : > { %v906_v4 = vld [vmem:[%s976_s24] sm:$0xff]   ;;  %832 = vmatprep.subr.bf16.mxu0 %v901_v3  ;;  %877 = vmatprep.subr.bf16.mxu1 %v901_v3  ;;  %v907_v10 = vld [vmem:[%s976_s24 + $0x8] sm:$0xff]   ;;  %v908_v12 = vld [vmem:[%s976_s24 + $0x10] sm:$0xff]   ;;  %s775_s14 = sshll.u32 %s1146_s13, 1 }
  0x11   : > { %842 = vmatprep.mubr.bf16.mxu0 %v906_v4  ;;  %v914_v7 = vld [vmem:[%s976_s24 + $0x40] sm:$0xff]   ;;  %v915_v11 = vld [vmem:[%s976_s24 + $0x48] sm:$0xff]   ;;  %v916_v13 = vld [vmem:[%s976_s24 + $0x50] sm:$0xff]   ;;  %s184_s17 = scalar_lea.vmem %s1142_s3, %s775_s14 }
  0x12   : > { %858 = vmatprep.mubr.bf16.mxu1 %v914_v7  ;;  %v909_v14 = vld [vmem:[%s976_s24 + $0x18] sm:$0xff]   ;;  %v910_v16 = vld [vmem:[%s976_s24 + $0x20] sm:$0xff]   ;;  %v911_v18 = vld [vmem:[%s976_s24 + $0x28] sm:$0xff]  }
  0x13   : > { %833 = vmatpush3.bf16.msra.mxu0 %v901_v3  ;;  %885 = vmatpush3.bf16.msra.mxu1 %v901_v3  ;;  %v917_v15 = vld [vmem:[%s976_s24 + $0x58] sm:$0xff]   ;;  %v918_v17 = vld [vmem:[%s976_s24 + $0x60] sm:$0xff]   ;;  %v919_v19 = vld [vmem:[%s976_s24 + $0x68] sm:$0xff]  }
  0x14   : > { %834 = vmatprep.subr.bf16.mxu0 %v902_v5  ;;  %878 = vmatprep.subr.bf16.mxu1 %v902_v5  ;;  %v912_v20 = vld [vmem:[%s976_s24 + $0x30] sm:$0xff]   ;;  %v913_v22 = vld [vmem:[%s976_s24 + $0x38] sm:$0xff]  }
  0x15   : > { %v920_v21 = vld [vmem:[%s976_s24 + $0x70] sm:$0xff]   ;;  %v921_v23 = vld [vmem:[%s976_s24 + $0x78] sm:$0xff]  }
  0x17   : > { %835 = vmatpush3.bf16.msra.mxu0 %v902_v5  ;;  %886 = vmatpush3.bf16.msra.mxu1 %v902_v5 }
  0x18   : > { %836 = vmatprep.subr.bf16.mxu0 %v903_v6  ;;  %879 = vmatprep.subr.bf16.mxu1 %v903_v6 }
  0x1b   : > { %837 = vmatpush3.bf16.msra.mxu0 %v903_v6  ;;  %887 = vmatpush3.bf16.msra.mxu1 %v903_v6 }
  0x1c   : > { %838 = vmatprep.subr.bf16.mxu0 %v904_v8  ;;  %880 = vmatprep.subr.bf16.mxu1 %v904_v8 }
  0x1f   : > { %839 = vmatpush3.bf16.msra.mxu0 %v904_v8  ;;  %888 = vmatpush3.bf16.msra.mxu1 %v904_v8 }
  0x20   : > { %840 = vmatprep.subr.bf16.mxu0 %v905_v9  ;;  %881 = vmatprep.subr.bf16.mxu1 %v905_v9 }
  0x23   : > { %841 = vmatpush3.bf16.msra.mxu0 %v905_v9  ;;  %889 = vmatpush3.bf16.msra.mxu1 %v905_v9 }
  0x26   : > { %843 = vmatmul.mubr.bf16.vlgmr.msra.gmra.mrb[0].mxu0 %v907_v10  ;;  %859 = vmatmul.mubr.bf16.vlgmr.msra.gmra.mrb[0].mxu1 %v915_v11 }
  0x27   : > { %846 = vmatprep.mubr.bf16.mxu0 %v908_v12  ;;  %862 = vmatprep.mubr.bf16.mxu1 %v916_v13 }
  0x2e   : > { %847 = vmatmul.mubr.bf16.gmra.mrb[4].mxu0 %v909_v14  ;;  %863 = vmatmul.mubr.bf16.gmra.mrb[4].mxu1 %v917_v15 }
  0x2f   : > { %850 = vmatprep.mubr.bf16.mxu0 %v910_v16  ;;  %866 = vmatprep.mubr.bf16.mxu1 %v918_v17 }
  0x36   : > { %851 = vmatmul.mubr.bf16.gmra.mrb[8].mxu0 %v911_v18  ;;  %867 = vmatmul.mubr.bf16.gmra.mrb[8].mxu1 %v919_v19 }
  0x37   : > { %854 = vmatprep.mubr.bf16.mxu0 %v912_v20  ;;  %870 = vmatprep.mubr.bf16.mxu1 %v920_v21 }
  0x3e   : > { %855 = vmatmul.mubr.bf16.gmra.mrb[12].mxu0 %v913_v22  ;;  %871 = vmatmul.mubr.bf16.gmra.mrb[12].mxu1 %v921_v23 }
  0xf9   : > { %v844_v24 = vpop.f32.mrb[0].mxu0  ;;  %v1015_v25 = vpop.f32.mrb[0].mxu1 }
  0xfa   : > { %541 = vst [vmem:[%s1013_s11 + $0x10] sm:$0xff] %v844_v24  ;;  %v412_v26 = vpop.f32.mrb[1].mxu0  ;;  %557 = vst [vmem:[%s1013_s11 + $0x90] sm:$0xff] %v1015_v25  ;;  %v1020_v27 = vpop.f32.mrb[1].mxu1  ;;  %v611_v35 = vmul.f32 %v844_v24, %v844_v24 }
  0xfb   : > { %539 = vst [vmem:[%s1013_s11] sm:$0xff] %v412_v26  ;;  %v845_v28 = vpop.f32.mrb[2].mxu0  ;;  %555 = vst [vmem:[%s1013_s11 + $0x80] sm:$0xff] %v1020_v27  ;;  %v1025_v29 = vpop.f32.mrb[2].mxu1  ;;  %v609_v32 = vmul.f32 %v412_v26, %v412_v26 }
  0xfc   : > { %542 = vst [vmem:[%s1013_s11 + $0x18] sm:$0xff] %v845_v28  ;;  %v415_v30 = vpop.f32.mrb[3].mxu0  ;;  %558 = vst [vmem:[%s1013_s11 + $0x98] sm:$0xff] %v1025_v29  ;;  %v1030_v31 = vpop.f32.mrb[3].mxu1  ;;  %v612_v38 = vmul.f32 %v845_v28, %v845_v28 }
  0xfd   : > { %540 = vst [vmem:[%s1013_s11 + $0x8] sm:$0xff] %v415_v30  ;;  %v571_v33 = vadd.f32 %v415_v30, %v412_v26  ;;  %v610_v34 = vmul.f32 %v415_v30, %v415_v30  ;;  %556 = vst [vmem:[%s1013_s11 + $0x88] sm:$0xff] %v1030_v31 }
  0xff   : > { %v572_v36 = vadd.f32 %v844_v24, %v571_v33  ;;  %v641_v37 = vadd.f32 %v610_v34, %v609_v32 }
 0x101   : > { %v642_v39 = vadd.f32 %v641_v37, %v611_v35  ;;  %v848_v40 = vpop.f32.mrb[4].mxu0  ;;  %v573_v41 = vadd.f32 %v845_v28, %v572_v36  ;;  %v1035_v42 = vpop.f32.mrb[4].mxu1 }
 0x102   : > { %545 = vst [vmem:[%s1013_s11 + $0x30] sm:$0xff] %v848_v40  ;;  %v428_v43 = vpop.f32.mrb[5].mxu0  ;;  %561 = vst [vmem:[%s1013_s11 + $0xb0] sm:$0xff] %v1035_v42  ;;  %v1040_v44 = vpop.f32.mrb[5].mxu1  ;;  %v615_v55 = vmul.f32 %v848_v40, %v848_v40 }
 0x103   : > { %543 = vst [vmem:[%s1013_s11 + $0x20] sm:$0xff] %v428_v43  ;;  %v574_v45 = vadd.f32 %v573_v41, %v428_v43  ;;  %v613_v46 = vmul.f32 %v428_v43, %v428_v43  ;;  %v643_v47 = vadd.f32 %v642_v39, %v612_v38  ;;  %v849_v48 = vpop.f32.mrb[6].mxu0  ;;  %559 = vst [vmem:[%s1013_s11 + $0xa0] sm:$0xff] %v1040_v44  ;;  %v1045_v49 = vpop.f32.mrb[6].mxu1 }
 0x104   : > { %546 = vst [vmem:[%s1013_s11 + $0x38] sm:$0xff] %v849_v48  ;;  %v431_v50 = vpop.f32.mrb[7].mxu0  ;;  %562 = vst [vmem:[%s1013_s11 + $0xb8] sm:$0xff] %v1045_v49  ;;  %v1050_v51 = vpop.f32.mrb[7].mxu1  ;;  %v616_v58 = vmul.f32 %v849_v48, %v849_v48  ;;  %v625_v41 = vmul.f32 %v1020_v27, %v1020_v27 }
 0x105   : > { %v644_v52 = vadd.f32 %v643_v47, %v613_v46  ;;  %544 = vst [vmem:[%s1013_s11 + $0x28] sm:$0xff] %v431_v50  ;;  %v575_v53 = vadd.f32 %v574_v45, %v431_v50  ;;  %v614_v54 = vmul.f32 %v431_v50, %v431_v50  ;;  %560 = vst [vmem:[%s1013_s11 + $0xa8] sm:$0xff] %v1050_v51 }
 0x106   : > { %v627_v50 = vmul.f32 %v1015_v25, %v1015_v25 }
 0x107   : > { %v576_v56 = vadd.f32 %v848_v40, %v575_v53  ;;  %v645_v57 = vadd.f32 %v644_v52, %v614_v54  ;;  %v628_v54 = vmul.f32 %v1025_v29, %v1025_v29 }
 0x109   : > { %v646_v59 = vadd.f32 %v645_v57, %v615_v55  ;;  %v852_v60 = vpop.f32.mrb[8].mxu0  ;;  %v577_v61 = vadd.f32 %v849_v48, %v576_v56  ;;  %v1055_v62 = vpop.f32.mrb[8].mxu1  ;;  %v626_v48 = vmul.f32 %v1030_v31, %v1030_v31 }
 0x10a   : > { %549 = vst [vmem:[%s1013_s11 + $0x50] sm:$0xff] %v852_v60  ;;  %v444_v63 = vpop.f32.mrb[9].mxu0  ;;  %565 = vst [vmem:[%s1013_s11 + $0xd0] sm:$0xff] %v1055_v62  ;;  %v1060_v0 = vpop.f32.mrb[9].mxu1  ;;  %v619_v11 = vmul.f32 %v852_v60, %v852_v60 }
 0x10b   : > { %547 = vst [vmem:[%s1013_s11 + $0x40] sm:$0xff] %v444_v63  ;;  %v578_v1 = vadd.f32 %v577_v61, %v444_v63  ;;  %v617_v2 = vmul.f32 %v444_v63, %v444_v63  ;;  %v647_v3 = vadd.f32 %v646_v59, %v616_v58  ;;  %v853_v4 = vpop.f32.mrb[10].mxu0  ;;  %563 = vst [vmem:[%s1013_s11 + $0xc0] sm:$0xff] %v1060_v0  ;;  %v1065_v5 = vpop.f32.mrb[10].mxu1 }
 0x10c   : > { %550 = vst [vmem:[%s1013_s11 + $0x58] sm:$0xff] %v853_v4  ;;  %v447_v6 = vpop.f32.mrb[11].mxu0  ;;  %566 = vst [vmem:[%s1013_s11 + $0xd8] sm:$0xff] %v1065_v5  ;;  %v1070_v7 = vpop.f32.mrb[11].mxu1  ;;  %v620_v14 = vmul.f32 %v853_v4, %v853_v4 }
 0x10d   : > { %v648_v8 = vadd.f32 %v647_v3, %v617_v2  ;;  %548 = vst [vmem:[%s1013_s11 + $0x48] sm:$0xff] %v447_v6  ;;  %v579_v9 = vadd.f32 %v578_v1, %v447_v6  ;;  %v618_v10 = vmul.f32 %v447_v6, %v447_v6  ;;  %564 = vst [vmem:[%s1013_s11 + $0xc8] sm:$0xff] %v1070_v7 }
 0x10f   : > { %v580_v12 = vadd.f32 %v852_v60, %v579_v9  ;;  %v649_v13 = vadd.f32 %v648_v8, %v618_v10  ;;  %v630_v60 = vmul.f32 %v1050_v51, %v1050_v51  ;;  %v634_v8 = vmul.f32 %v1070_v7, %v1070_v7 }
 0x111   : > { %v650_v15 = vadd.f32 %v649_v13, %v619_v11  ;;  %v856_v16 = vpop.f32.mrb[12].mxu0  ;;  %v581_v17 = vadd.f32 %v853_v4, %v580_v12  ;;  %v1075_v18 = vpop.f32.mrb[12].mxu1 }
 0x112   : > { %553 = vst [vmem:[%s1013_s11 + $0x70] sm:$0xff] %v856_v16  ;;  %v460_v19 = vpop.f32.mrb[13].mxu0  ;;  %569 = vst [vmem:[%s1013_s11 + $0xf0] sm:$0xff] %v1075_v18  ;;  %v524_v20 = vpop.f32.mrb[13].mxu1  ;;  %v623_v35 = vmul.f32 %v856_v16, %v856_v16 }
 0x113   : > { %551 = vst [vmem:[%s1013_s11 + $0x60] sm:$0xff] %v460_v19  ;;  %v582_v21 = vadd.f32 %v581_v17, %v460_v19  ;;  %v621_v22 = vmul.f32 %v460_v19, %v460_v19  ;;  %v651_v23 = vadd.f32 %v650_v15, %v620_v14  ;;  %v857_v24 = vpop.f32.mrb[14].mxu0  ;;  %567 = vst [vmem:[%s1013_s11 + $0xe0] sm:$0xff] %v524_v20  ;;  %v1082_v26 = vpop.f32.mrb[14].mxu1 }
 0x114   : > { %554 = vst [vmem:[%s1013_s11 + $0x78] sm:$0xff] %v857_v24  ;;  %v463_v28 = vpop.f32.mrb[15].mxu0  ;;  %570 = vst [vmem:[%s1013_s11 + $0xf8] sm:$0xff] %v1082_v26  ;;  %v527_v30 = vpop.f32.mrb[15].mxu1  ;;  %v624_v38 = vmul.f32 %v857_v24, %v857_v24  ;;  %v637_v12 = vmul.f32 %v524_v20, %v524_v20  ;;  %v639_v17 = vmul.f32 %v1075_v18, %v1075_v18 }
 0x115   : > { %v652_v32 = vadd.f32 %v651_v23, %v621_v22  ;;  %552 = vst [vmem:[%s1013_s11 + $0x68] sm:$0xff] %v463_v28  ;;  %v583_v33 = vadd.f32 %v582_v21, %v463_v28  ;;  %v622_v34 = vmul.f32 %v463_v28, %v463_v28  ;;  %568 = vst [vmem:[%s1013_s11 + $0xe8] sm:$0xff] %v527_v30 }
 0x116   : > { %v640_v21 = vmul.f32 %v1082_v26, %v1082_v26 }
 0x117   : > { %v584_v36 = vadd.f32 %v856_v16, %v583_v33  ;;  %v653_v37 = vadd.f32 %v652_v32, %v622_v34 }
 0x119   : > { %v654_v39 = vadd.f32 %v653_v37, %v623_v35  ;;  %v585_v40 = vadd.f32 %v857_v24, %v584_v36 }
 0x11b   : > { %v586_v43 = vadd.f32 %v585_v40, %v1020_v27  ;;  %v655_v45 = vadd.f32 %v654_v39, %v624_v38  ;;  %v629_v27 = vmul.f32 %v1040_v44, %v1040_v44 }
 0x11d   : > { %v656_v46 = vadd.f32 %v655_v45, %v625_v41  ;;  %v587_v47 = vadd.f32 %v586_v43, %v1030_v31 }
 0x11f   : > { %v588_v52 = vadd.f32 %v1015_v25, %v587_v47  ;;  %v657_v53 = vadd.f32 %v656_v46, %v626_v48  ;;  %v631_v25 = vmul.f32 %v1035_v42, %v1035_v42 }
 0x121   : > { %v658_v55 = vadd.f32 %v657_v53, %v627_v50  ;;  %v589_v56 = vadd.f32 %v1025_v29, %v588_v52  ;;  %v632_v29 = vmul.f32 %v1045_v49, %v1045_v49 }
 0x123   : > { %v590_v57 = vadd.f32 %v589_v56, %v1040_v44  ;;  %v659_v58 = vadd.f32 %v658_v55, %v628_v54  ;;  %v633_v44 = vmul.f32 %v1060_v0, %v1060_v0 }
 0x125   : > { %v660_v59 = vadd.f32 %v659_v58, %v629_v27  ;;  %v591_v31 = vadd.f32 %v590_v57, %v1050_v51 }
 0x127   : > { %v592_v61 = vadd.f32 %v1035_v42, %v591_v31  ;;  %v661_v63 = vadd.f32 %v660_v59, %v630_v60  ;;  %v635_v42 = vmul.f32 %v1055_v62, %v1055_v62 }
 0x129   : > { %v662_v1 = vadd.f32 %v661_v63, %v631_v25  ;;  %v593_v2 = vadd.f32 %v1045_v49, %v592_v61  ;;  %v636_v49 = vmul.f32 %v1065_v5, %v1065_v5 }
 0x12b   : > { %v594_v3 = vadd.f32 %v593_v2, %v1060_v0  ;;  %v663_v4 = vadd.f32 %v662_v1, %v632_v29 }
 0x12d   : > { %v664_v6 = vadd.f32 %v663_v4, %v633_v44  ;;  %v595_v51 = vadd.f32 %v594_v3, %v1070_v7  ;;  %v638_v7 = vmul.f32 %v527_v30, %v527_v30 }
 0x12f   : > { %v596_v9 = vadd.f32 %v1055_v62, %v595_v51  ;;  %v665_v10 = vadd.f32 %v664_v6, %v634_v8 }
 0x131   : > { %v666_v11 = vadd.f32 %v665_v10, %v635_v42  ;;  %v597_v0 = vadd.f32 %v1065_v5, %v596_v9 }
 0x133   : > { %v598_v13 = vadd.f32 %v597_v0, %v524_v20  ;;  %v667_v14 = vadd.f32 %v666_v11, %v636_v49 }
 0x135   : > { %v668_v15 = vadd.f32 %v667_v14, %v637_v12  ;;  %v599_v16 = vadd.f32 %v598_v13, %v527_v30 }
 0x137   : > { %v600_v19 = vadd.f32 %v1075_v18, %v599_v16  ;;  %v669_v62 = vadd.f32 %v668_v15, %v638_v7 }
 0x139   : > { %v601_v22 = vadd.f32 %v1082_v26, %v600_v19  ;;  %v670_v5 = vadd.f32 %v669_v62, %v639_v17 }
 0x13b   : > { %v602_v23 = vrot.slane %v601_v22, 4  ;;  %v671_v24 = vadd.f32 %v670_v5, %v640_v21 }
 0x13d   : > { %v603_v20 = vadd.f32 %v602_v23, %v601_v22  ;;  %v672_v28 = vrot.slane %v671_v24, 4 }
 0x13f   : > { %v604_v32 = vrot.slane %v603_v20, 2  ;;  %v673_v30 = vadd.f32 %v672_v28, %v671_v24 }
 0x141   : > { %v605_v33 = vadd.f32 %v604_v32, %v603_v20  ;;  %v674_v34 = vrot.slane %v673_v30, 2 }
 0x143   : > { %v606_v35 = vrot.slane %v605_v33, 1  ;;  %v675_v18 = vadd.f32 %v674_v34, %v673_v30 }
 0x145   : > { %v607_v36 = vadd.f32 %v606_v35, %v605_v33  ;;  %v676_v37 = vrot.slane %v675_v18, 1 }
 0x147   : > { %608 = vst [vmem:[%s184_s17] sm:$0x1] %v607_v36  ;;  %v677_v26 = vadd.f32 %v676_v37, %v675_v18 }
 0x149   : > { %678 = vst [vmem:[%s184_s17 + $0x1] sm:$0x1] %v677_v26 }
 0x14a PF: > { %s14_s12 = sadd.s32 1, %s928_s12  }
 0x14b   : > { %p11_p5 = scmp.ge.s32.totalorder %s14_s12, 4  }
 0x14d   :  { %13 = sbr.rel (!%p11_p5) target bundleno = 1 (0x1), region = 70 }

// kernel: bottleneck_forward.7
= control target key start
LH: loop header
LB: loop body
LE: loop exit
PB: predicated region body
PF: predicated region fallthrough
CT: control target
= control target key end

     0   :  { %s678_s18 = smov 0   ;;  %s750_s0 = inlined_call_operand.vmem [shape: f32[128,128], index: 0, kind: input, shape index: {}]   ;;  %s751_s1 = inlined_call_operand.vmem [shape: f32[1,128], index: 1, kind: input, shape index: {}]   ;;  %s752_s2 = inlined_call_operand.vmem [shape: f32[1,128], index: 2, kind: input, shape index: {}]   ;;  %s753_s3 = inlined_call_operand.vmem [shape: bf16[128,128], index: 3, kind: input, shape index: {}]   ;;  %s754_s4 = inlined_call_operand.vmem [shape: f32[128,128], index: 4, kind: output, shape index: {0}]   ;;  %s755_s5 = inlined_call_operand.vmem [shape: f32[2,2,128], index: 5, kind: output, shape index: {1}]  }
   0x1 LB: > { %s684_s19 = sadd.s32 4294967295, %s646_s18   ;;  %p554_p0 = scmp.ge.s32.totalorder %s646_s18, 1  ;;  %s646_s18 = sphi %s678_s18, %s16_s18  }
   0x2   : > { %p191_p1 = scmp.lt.s32.totalorder %s646_s18, 3 }
   0x4   : > { %p192_p2 = pnand %p554_p0, %p191_p1 }
   0x5   : > { %v632_v0 = vld [vmem:[%s753_s3] sm:$0xff] (!%p192_p2)   ;;  %s555_s22 = sshll.u32 (!%p192_p2), %s684_s19, 3  ;;  %v633_v1 = vld [vmem:[%s753_s3 + $0x8] sm:$0xff] (!%p192_p2)   ;;  %v634_v2 = vld [vmem:[%s753_s3 + $0x10] sm:$0xff] (!%p192_p2)   ;;  %p235_p4 = scmp.lt.s32.totalorder (!%p192_p2), %s684_s19, 1 }
   0x6   : > { %195 = sbr.rel (%p192_p2) target bundleno = 282 (0x11a), region = 36  ;;  %p224_p3 = scmp.lt.s32.totalorder (!%p192_p2), %s555_s22, 15  ;;  %584 = vmatprep.subr.bf16.mxu0 (!%p192_p2), %v632_v0  ;;  %608 = vmatprep.subr.bf16.mxu1 (!%p192_p2), %v632_v0  ;;  %v635_v3 = vld [vmem:[%s753_s3 + $0x18] sm:$0xff] (!%p192_p2)   ;;  %v560_v6 = vld [vmem:[%s751_s1] ss:$0 sm:$0xff] (!%p192_p2)  ;;  %v637_v27 = vld [vmem:[%s753_s3 + $0x28] sm:$0xff] (!%p192_p2)  }
   0x7   : > { %585 = vmatpush3.bf16.msra.mxu0 (!%p192_p2), %v632_v0  ;;  %616 = vmatpush3.bf16.msra.mxu1 (!%p192_p2), %v632_v0  ;;  %v561_v9 = vld [vmem:[%s752_s2] ss:$0 sm:$0xff] (!%p192_p2)  ;;  %v638_v34 = vld [vmem:[%s753_s3 + $0x30] sm:$0xff] (!%p192_p2)   ;;  %v639_v39 = vld [vmem:[%s753_s3 + $0x38] sm:$0xff] (!%p192_p2)  }
   0x8   : > { %586 = vmatprep.subr.bf16.mxu0 (!%p192_p2), %v633_v1  ;;  %609 = vmatprep.subr.bf16.mxu1 (!%p192_p2), %v633_v1  ;;  %v636_v15 = vld [vmem:[%s753_s3 + $0x20] sm:$0xff] (!%p192_p2)  }
   0xb   : > { %587 = vmatpush3.bf16.msra.mxu0 (!%p192_p2), %v633_v1  ;;  %617 = vmatpush3.bf16.msra.mxu1 (!%p192_p2), %v633_v1 }
   0xc   : > { %588 = vmatprep.subr.bf16.mxu0 (!%p192_p2), %v634_v2  ;;  %610 = vmatprep.subr.bf16.mxu1 (!%p192_p2), %v634_v2 }
   0xd   : > { %s757_s22 = smov (!%p224_p3, %s555_s22), 15  ;;  %s759_s19 = smov (!%p235_p4, %s684_s19), 1 }
   0xe   : > { %s556_s27 = sshll.u32 %s757_s22, 3  ;;  %s559_s22 = sshll.u32 %s759_s19, 1 }
   0xf   : > { %s706_s30 = scalar_lea.vmem %s750_s0, %s556_s27  ;;  %589 = vmatpush3.bf16.msra.mxu0 %v634_v2  ;;  %618 = vmatpush3.bf16.msra.mxu1 %v634_v2  ;;  %s233_s25 = scalar_lea.vmem %s754_s4, %s556_s27 }
  0x10   : > { %v240_v4 = vld [vmem:[%s706_s30] sm:$0xff]  ;;  %v241_v5 = vld [vmem:[%s706_s30 + $0x8] sm:$0xff]  ;;  %590 = vmatprep.subr.bf16.mxu0 %v635_v3  ;;  %611 = vmatprep.subr.bf16.mxu1 %v635_v3  ;;  %v242_v20 = vld [vmem:[%s706_s30 + $0x10] sm:$0xff]  ;;  %s238_s28 = scalar_lea.vmem %s755_s5, %s559_s22 }
  0x11   : > { %v255_v7 = vmul.f32 %v560_v6, %v240_v4  ;;  %v256_v8 = vmul.f32 %v560_v6, %v241_v5  ;;  %v244_v10 = vld [vmem:[%s706_s30 + $0x20] sm:$0xff]  ;;  %v245_v11 = vld [vmem:[%s706_s30 + $0x28] sm:$0xff]  ;;  %v243_v23 = vld [vmem:[%s706_s30 + $0x18] sm:$0xff]  ;;  %v257_v29 = vmul.f32 %v560_v6, %v242_v20 }
  0x12   : > { %v259_v14 = vmul.f32 %v560_v6, %v244_v10  ;;  %v260_v16 = vmul.f32 %v560_v6, %v245_v11  ;;  %v246_v25 = vld [vmem:[%s706_s30 + $0x30] sm:$0xff]  ;;  %v247_v26 = vld [vmem:[%s706_s30 + $0x38] sm:$0xff]  ;;  %v258_v30 = vmul.f32 %v560_v6, %v243_v23 }
  0x13   : > { %v270_v12 = vadd.f32 %v561_v9, %v255_v7  ;;  %v271_v13 = vadd.f32 %v561_v9, %v256_v8  ;;  %591 = vmatpush3.bf16.msra.mxu0 %v635_v3  ;;  %619 = vmatpush3.bf16.msra.mxu1 %v635_v3  ;;  %v261_v32 = vmul.f32 %v560_v6, %v246_v25 }
  0x14   : > { %v274_v19 = vadd.f32 %v561_v9, %v259_v14  ;;  %v275_v21 = vadd.f32 %v561_v9, %v260_v16  ;;  %592 = vmatprep.subr.bf16.mxu0 %v636_v15  ;;  %612 = vmatprep.subr.bf16.mxu1 %v636_v15  ;;  %v262_v33 = vmul.f32 %v560_v6, %v247_v26 }
  0x15   : > { %v278_v17 = vmax.f32 %v270_v12, 0.0  ;;  %v279_v18 = vmax.f32 %v271_v13, 0.0  ;;  %v272_v35 = vadd.f32 %v561_v9, %v257_v29  ;;  %v273_v36 = vadd.f32 %v561_v9, %v258_v30 }
  0x16   : > { %v282_v24 = vmax.f32 %v274_v19, 0.0  ;;  %v283_v28 = vmax.f32 %v275_v21, 0.0  ;;  %v276_v37 = vadd.f32 %v561_v9, %v261_v32  ;;  %v277_v38 = vadd.f32 %v561_v9, %v262_v33 }
  0x17   : > { %v286_v22 = vpack.c.bf16 %v279_v18, %v278_v17  ;;  %593 = vmatpush3.bf16.msra.mxu0 %v636_v15  ;;  %620 = vmatpush3.bf16.msra.mxu1 %v636_v15  ;;  %v280_v40 = vmax.f32 %v272_v35, 0.0  ;;  %v281_v41 = vmax.f32 %v273_v36, 0.0 }
  0x18   : > { %v288_v31 = vpack.c.bf16 %v283_v28, %v282_v24  ;;  %594 = vmatprep.subr.bf16.mxu0 %v637_v27  ;;  %613 = vmatprep.subr.bf16.mxu1 %v637_v27  ;;  %v284_v42 = vmax.f32 %v276_v37, 0.0  ;;  %v285_v43 = vmax.f32 %v277_v38, 0.0 }
  0x19   : > { %600 = vmatprep.mubr.bf16.mxu0 %v286_v22  ;;  %v287_v44 = vpack.c.bf16 %v281_v41, %v280_v40 }
  0x1a   : > { %604 = vmatprep.mubr.bf16.mxu1 %v288_v31  ;;  %v289_v45 = vpack.c.bf16 %v285_v43, %v284_v42 }
  0x1b   : > { %595 = vmatpush3.bf16.msra.mxu0 %v637_v27  ;;  %621 = vmatpush3.bf16.msra.mxu1 %v637_v27 }
  0x1c   : > { %596 = vmatprep.subr.bf16.mxu0 %v638_v34  ;;  %614 = vmatprep.subr.bf16.mxu1 %v638_v34 }
  0x1f   : > { %597 = vmatpush3.bf16.msra.mxu0 %v638_v34  ;;  %622 = vmatpush3.bf16.msra.mxu1 %v638_v34 }
  0x20   : > { %598 = vmatprep.subr.bf16.mxu0 %v639_v39  ;;  %615 = vmatprep.subr.bf16.mxu1 %v639_v39 }
  0x23   : > { %599 = vmatpush3.bf16.msra.mxu0 %v639_v39  ;;  %623 = vmatpush3.bf16.msra.mxu1 %v639_v39 }
  0x26   : > { %601 = vmatmul.mubr.bf16.vlgmr.msra.gmra.mrb[0].mxu0 %v287_v44  ;;  %605 = vmatmul.mubr.bf16.vlgmr.msra.gmra.mrb[0].mxu1 %v289_v45 }
  0xf9   : > { %v602_v46 = vpop.f32.mrb[0].mxu0  ;;  %v606_v47 = vpop.f32.mrb[0].mxu1 }
  0xfa   : > { %421 = vst [vmem:[%s233_s25 + $0x10] sm:$0xff] %v602_v46  ;;  %v388_v48 = vpop.f32.mrb[1].mxu0  ;;  %425 = vst [vmem:[%s233_s25 + $0x30] sm:$0xff] %v606_v47  ;;  %v404_v49 = vpop.f32.mrb[1].mxu1  ;;  %v443_v57 = vmul.f32 %v602_v46, %v602_v46  ;;  %v447_v5 = vmul.f32 %v606_v47, %v606_v47 }
  0xfb   : > { %419 = vst [vmem:[%s233_s25] sm:$0xff] %v388_v48  ;;  %v603_v50 = vpop.f32.mrb[2].mxu0  ;;  %423 = vst [vmem:[%s233_s25 + $0x20] sm:$0xff] %v404_v49  ;;  %v607_v51 = vpop.f32.mrb[2].mxu1  ;;  %v441_v54 = vmul.f32 %v388_v48, %v388_v48  ;;  %v445_v63 = vmul.f32 %v404_v49, %v404_v49 }
  0xfc   : > { %422 = vst [vmem:[%s233_s25 + $0x18] sm:$0xff] %v603_v50  ;;  %v391_v52 = vpop.f32.mrb[3].mxu0  ;;  %426 = vst [vmem:[%s233_s25 + $0x38] sm:$0xff] %v607_v51  ;;  %v407_v53 = vpop.f32.mrb[3].mxu1  ;;  %v444_v60 = vmul.f32 %v603_v50, %v603_v50  ;;  %v448_v8 = vmul.f32 %v607_v51, %v607_v51 }
  0xfd   : > { %420 = vst [vmem:[%s233_s25 + $0x8] sm:$0xff] %v391_v52  ;;  %v427_v55 = vadd.f32 %v391_v52, %v388_v48  ;;  %v442_v56 = vmul.f32 %v391_v52, %v391_v52  ;;  %424 = vst [vmem:[%s233_s25 + $0x28] sm:$0xff] %v407_v53  ;;  %v446_v4 = vmul.f32 %v407_v53, %v407_v53 }
  0xff   : > { %v428_v58 = vadd.f32 %v602_v46, %v427_v55  ;;  %v449_v59 = vadd.f32 %v442_v56, %v441_v54 }
 0x101   : > { %v450_v61 = vadd.f32 %v449_v59, %v443_v57  ;;  %v429_v62 = vadd.f32 %v603_v50, %v428_v58 }
 0x103   : > { %v430_v0 = vadd.f32 %v429_v62, %v404_v49  ;;  %v451_v1 = vadd.f32 %v450_v61, %v444_v60 }
 0x105   : > { %v452_v2 = vadd.f32 %v451_v1, %v445_v63  ;;  %v431_v3 = vadd.f32 %v430_v0, %v407_v53 }
 0x107   : > { %v432_v6 = vadd.f32 %v606_v47, %v431_v3  ;;  %v453_v7 = vadd.f32 %v452_v2, %v446_v4 }
 0x109   : > { %v433_v9 = vadd.f32 %v607_v51, %v432_v6  ;;  %v454_v10 = vadd.f32 %v453_v7, %v447_v5 }
 0x10b   : > { %v434_v11 = vrot.slane %v433_v9, 4  ;;  %v455_v12 = vadd.f32 %v454_v10, %v448_v8 }
 0x10d   : > { %v435_v13 = vadd.f32 %v434_v11, %v433_v9  ;;  %v456_v14 = vrot.slane %v455_v12, 4 }
 0x10f   : > { %v436_v15 = vrot.slane %v435_v13, 2  ;;  %v457_v16 = vadd.f32 %v456_v14, %v455_v12 }
 0x111   : > { %v437_v17 = vadd.f32 %v436_v15, %v435_v13  ;;  %v458_v18 = vrot.slane %v457_v16, 2 }
 0x113   : > { %v438_v19 = vrot.slane %v437_v17, 1  ;;  %v459_v20 = vadd.f32 %v458_v18, %v457_v16 }
 0x115   : > { %v439_v21 = vadd.f32 %v438_v19, %v437_v17  ;;  %v460_v22 = vrot.slane %v459_v20, 1 }
 0x117   : > { %440 = vst [vmem:[%s238_s28] sm:$0x1] %v439_v21  ;;  %v461_v23 = vadd.f32 %v460_v22, %v459_v20 }
 0x119   : > { %462 = vst [vmem:[%s238_s28 + $0x1] sm:$0x1] %v461_v23 }
 0x11a PF: > { %s16_s18 = sadd.s32 1, %s646_s18  }
 0x11b   : > { %p13_p5 = scmp.ge.s32.totalorder %s16_s18, 4  }
 0x11d   :  { %15 = sbr.rel (!%p13_p5) target bundleno = 1 (0x1), region = 78 }

// kernel: bottleneck_forward.9
= control target key start
LH: loop header
LB: loop body
LE: loop exit
PB: predicated region body
PF: predicated region fallthrough
CT: control target
= control target key end

     0   :  { %11 = vsyncpa [#allocation3], 0  ;;  %s809_s0 = inlined_call_operand.vmem [shape: f32[128,128], index: 0, kind: input, shape index: {}]   ;;  %s810_s1 = inlined_call_operand.vmem [shape: f32[1,128], index: 1, kind: input, shape index: {}]   ;;  %s811_s2 = inlined_call_operand.vmem [shape: f32[1,128], index: 2, kind: input, shape index: {}]   ;;  %s812_s3 = inlined_call_operand.vmem [shape: f32[128,128], index: 3, kind: input, shape index: {}]   ;;  %s813_s4 = inlined_call_operand.vmem [shape: f32[1,128], index: 4, kind: input, shape index: {}]   ;;  %s814_s5 = inlined_call_operand.vmem [shape: f32[1,128], index: 5, kind: input, shape index: {}]   ;;  %s815_s6 = inlined_call_operand.hbm [shape: f32[128,128], index: 6, kind: output, shape index: {}]  }
   0x1   :  { %13 = vsyncpa [#allocation3 + $0x1], 0  ;;  %s625_s21 = smov 0   ;;  %s627_s22 = smov 0  }
   0x2   :  { %s629_s23 = smov 0   ;;  %s631_s24 = smov 0  }
   0x3 LB: > { %s646_s25 = sadd.s32 4294967295, %s585_s24   ;;  %s463_s26 = sadd.s32 4294967294, %s585_s24   ;;  %s585_s24 = sphi %s631_s24, %s821_s24   ;;  %s581_s23 = sphi %s629_s23, %s820_s23   ;;  %s577_s22 = sphi %s627_s22, %s819_s22   ;;  %s573_s21 = sphi %s625_s21, %s818_s21  }
   0x4   : > { %s650_s27 = sadd.s32 1, %s585_s24   ;;  %s162_s28 = sadd.s32 1, %s581_s23 }
   0x5   : > { %s159_s29 = ssub.s32 %s585_s24, %s650_s27  ;;  %p172_p0 = scmp.ne.s32.totalorder %s581_s23, %s577_s22 }
   0x6   : > { %p160_p1 = scmp.eq.s32.totalorder %s159_s29, 0  ;;  %p173_p2 = scmp.eq.s32.totalorder %s646_s25, 1 }
   0x7   : > { %p178_p3 = scmp.ne.s32.totalorder %s577_s22, %s573_s21  ;;  %p179_p4 = scmp.eq.s32.totalorder %s463_s26, 1 }
   0x8   : > { %s661_s30 = scalar_select %p160_p1, %s581_s23, %s162_s28  }
   0x9   : > { %p663_p5 = por %p173_p2, %p172_p0  ;;  %p667_p6 = por %p179_p4, %p178_p3 }
   0xa   : > { %p466_p7 = scmp.ge.s32.totalorder %s585_s24, 1  ;;  %p227_p8 = scmp.lt.s32.totalorder %s585_s24, 3 }
   0xc   : > { %p228_p9 = pnand %p466_p7, %p227_p8 }
   0xd   : > { %s468_s9 = sshll.u32 (!%p228_p9), %s646_s25, 3  ;;  %v677_v0 = vld [vmem:[%s810_s1] ss:$0 sm:$0xff] (!%p228_p9)  ;;  %s259_s11 = sand.u32 (!%p228_p9), 1, %s577_s22  }
   0xe   : > { %231 = sbr.rel (%p228_p9) target bundleno = 57 (0x39), region = 44  ;;  %p263_p10 = scmp.lt.s32.totalorder (!%p228_p9), %s468_s9, 15  ;;  %v682_v1 = vld [vmem:[%s813_s4] ss:$0 sm:$0xff] (!%p228_p9) }
   0xf   : > { %v697_v2 = vld [vmem:[%s811_s2] ss:$0 sm:$0xff] (!%p228_p9)  ;;  %s481_s14 = sshll.u32 (!%p228_p9), %s646_s25, 10  ;;  %s768_s25 = scalar_lea.sflag (!%p228_p9), [#allocation3], %s259_s11 }
  0x10   : > { %v702_v3 = vld [vmem:[%s814_s5] ss:$0 sm:$0xff] (!%p228_p9)  ;;  %s587_s19 = smov (!%p228_p9), [#allocation2]  }
  0x15   : > { %s823_s9 = smov (!%p263_p10, %s468_s9), 15 }
  0x16   : > { %s469_s10 = sshll.u32 %s823_s9, 3 }
  0x17   : > { %s687_s17 = scalar_lea.vmem %s809_s0, %s469_s10  ;;  %s692_s20 = scalar_lea.vmem %s812_s3, %s469_s10 }
  0x18   : > { %v275_v4 = vld [vmem:[%s687_s17] sm:$0xff]  ;;  %v276_v6 = vld [vmem:[%s687_s17 + $0x8] sm:$0xff]  ;;  %v277_v11 = vld [vmem:[%s687_s17 + $0x10] sm:$0xff]  ;;  %s722_s10 = sshll.u32 %s259_s11, 6 }
  0x19   : > { %v313_v5 = vld [vmem:[%s692_s20] sm:$0xff]  ;;  %v290_v7 = vmul.f32 %v677_v0, %v275_v4  ;;  %v291_v9 = vmul.f32 %v677_v0, %v276_v6  ;;  %v314_v10 = vld [vmem:[%s692_s20 + $0x8] sm:$0xff]  ;;  %v315_v12 = vld [vmem:[%s692_s20 + $0x10] sm:$0xff]  ;;  %v292_v14 = vmul.f32 %v677_v0, %v277_v11  ;;  %s261_s12 = scalar_lea.vmem [#allocation2], %s722_s10 }
  0x1a   : > { %v328_v8 = vmul.f32 %v682_v1, %v313_v5  ;;  %v329_v13 = vmul.f32 %v682_v1, %v314_v10  ;;  %v330_v15 = vmul.f32 %v682_v1, %v315_v12  ;;  %v278_v16 = vld [vmem:[%s687_s17 + $0x18] sm:$0xff]  ;;  %v279_v18 = vld [vmem:[%s687_s17 + $0x20] sm:$0xff]  ;;  %v280_v24 = vld [vmem:[%s687_s17 + $0x28] sm:$0xff]  ;;  %s389_s13 = sshll.u32 %s261_s12, 4  ;;  %s759_s13 = int_to_ptr.vmem [resolvable:$true] %s389_s13 }
  0x1b   : > { %v316_v17 = vld [vmem:[%s692_s20 + $0x18] sm:$0xff]  ;;  %v305_v19 = vadd.f32 %v697_v2, %v290_v7  ;;  %v306_v21 = vadd.f32 %v697_v2, %v291_v9  ;;  %v293_v22 = vmul.f32 %v677_v0, %v278_v16  ;;  %v317_v23 = vld [vmem:[%s692_s20 + $0x20] sm:$0xff]  ;;  %v307_v26 = vadd.f32 %v697_v2, %v292_v14  ;;  %v318_v29 = vld [vmem:[%s692_s20 + $0x28] sm:$0xff]  ;;  %s523_s18 = scalar_lea.vmem %s759_s13, 1024 }
  0x1c   : > { %v343_v20 = vadd.f32 %v702_v3, %v328_v8  ;;  %v344_v25 = vadd.f32 %v702_v3, %v329_v13  ;;  %v345_v27 = vadd.f32 %v702_v3, %v330_v15  ;;  %v331_v28 = vmul.f32 %v682_v1, %v316_v17  ;;  %v281_v38 = vld [vmem:[%s687_s17 + $0x30] sm:$0xff]  ;;  %v282_v44 = vld [vmem:[%s687_s17 + $0x38] sm:$0xff]  ;;  %s764_s17 = scalar_lea.hbm %s815_s6, %s481_s14  ;;  %p524_p11 = scmp.ne.s32.totalorder %s759_s13, %s523_s18 }
  0x1d   : > { %v308_v31 = vadd.f32 %v697_v2, %v293_v22  ;;  %v294_v32 = vmul.f32 %v677_v0, %v279_v18  ;;  %v332_v33 = vmul.f32 %v682_v1, %v317_v23  ;;  %v295_v37 = vmul.f32 %v677_v0, %v280_v24  ;;  %v319_v39 = vld [vmem:[%s692_s20 + $0x30] sm:$0xff]  ;;  %v320_v45 = vld [vmem:[%s692_s20 + $0x38] sm:$0xff]  ;;  %s527_s20 = sshll.u32 %s587_s19, 4  ;;  %s528_s20 = int_to_ptr.vmem [resolvable:$false] %s527_s20 }
  0x1e   : > { %v351_v30 = vadd.f32 %v343_v20, %v305_v19  ;;  %v352_v34 = vadd.f32 %v344_v25, %v306_v21  ;;  %v353_v35 = vadd.f32 %v345_v27, %v307_v26  ;;  %v346_v36 = vadd.f32 %v702_v3, %v331_v28  ;;  %p525_p12 = pnand %p524_p11, %p663_p5  ;;  %s529_s26 = scalar_lea.vmem %s528_s20, 2048 }
  0x1f   : > { %v309_v41 = vadd.f32 %v697_v2, %v294_v32  ;;  %v347_v42 = vadd.f32 %v702_v3, %v332_v33  ;;  %v333_v43 = vmul.f32 %v682_v1, %v318_v29  ;;  %v310_v49 = vadd.f32 %v697_v2, %v295_v37  ;;  %p530_p0 = scmp.lt.s32.totalorder %s759_s13, %s528_s20  ;;  %p531_p1 = scmp.lt.s32.totalorder %s529_s26, %s523_s18 }
  0x20   : > { %v359_v40 = vmax.f32 %v351_v30, 0.0  ;;  %v360_v46 = vmax.f32 %v352_v34, 0.0  ;;  %v361_v47 = vmax.f32 %v353_v35, 0.0  ;;  %v354_v48 = vadd.f32 %v346_v36, %v308_v31  ;;  %p526_p13 = pneg %p525_p12 }
  0x21   : > { %v355_v50 = vadd.f32 %v347_v42, %v309_v41  ;;  %v348_v51 = vadd.f32 %v702_v3, %v333_v43  ;;  %v296_v52 = vmul.f32 %v677_v0, %v281_v38  ;;  %v334_v53 = vmul.f32 %v682_v1, %v319_v39  ;;  %p532_p2 = por %p531_p1, %p530_p0 }
  0x22   : > { %367 = vst [vmem:[%s261_s12] sm:$0xff] %v359_v40  ;;  %368 = vst [vmem:[%s261_s12 + $0x8] sm:$0xff] %v360_v46  ;;  %v362_v54 = vmax.f32 %v354_v48, 0.0  ;;  %v297_v55 = vmul.f32 %v677_v0, %v282_v44  ;;  %v335_v56 = vmul.f32 %v682_v1, %v320_v45 }
  0x23   : > { %369 = vst [vmem:[%s261_s12 + $0x10] sm:$0xff] %v361_v47  ;;  %v363_v57 = vmax.f32 %v355_v50, 0.0  ;;  %v356_v58 = vadd.f32 %v348_v51, %v310_v49  ;;  %v311_v59 = vadd.f32 %v697_v2, %v296_v52  ;;  %v349_v60 = vadd.f32 %v702_v3, %v334_v53  ;;  %p533_p3 = pnand %p532_p2, %p526_p13 }
  0x24   : > { %370 = vst [vmem:[%s261_s12 + $0x18] sm:$0xff] %v362_v54  ;;  %v312_v61 = vadd.f32 %v697_v2, %v297_v55  ;;  %v350_v62 = vadd.f32 %v702_v3, %v335_v56 }
  0x25   : > { %371 = vst [vmem:[%s261_s12 + $0x20] sm:$0xff] %v363_v57  ;;  %v364_v63 = vmax.f32 %v356_v58, 0.0  ;;  %v357_v0 = vadd.f32 %v349_v60, %v311_v59 }
  0x26   : > { %v358_v4 = vadd.f32 %v350_v62, %v312_v61 }
  0x27   : > { %372 = vst [vmem:[%s261_s12 + $0x28] sm:$0xff] %v364_v63  ;;  %v365_v1 = vmax.f32 %v357_v0, 0.0 }
  0x28   : > { %v366_v2 = vmax.f32 %v358_v4, 0.0 }
  0x29   : > { %373 = vst [vmem:[%s261_s12 + $0x30] sm:$0xff] %v365_v1 }
  0x2a   : > { %374 = vst [vmem:[%s261_s12 + $0x38] sm:$0xff] %v366_v2 }
  0x2b   : > { %536 = shalt.err (!%p533_p3)
}
  0x2c   : > { %s537_s28 = scalar_lea.hbm %s764_s17, 1024  ;;  %s541_s11 = scalar_lea.hbm %s815_s6, 2048 }
  0x2d   : > { %p538_p4 = scmp.ne.s32.totalorder %s764_s17, %s537_s28  ;;  %p542_p9 = scmp.lt.u32.totalorder %s764_s17, %s815_s6 }
  0x2e   : > { %p543_p10 = scmp.lt.u32.totalorder %s541_s11, %s537_s28  ;;  %p545_p12 = scmp.lt.u32.totalorder %s537_s28, %s764_s17 }
  0x2f   : > { %p539_p7 = pnand %p538_p4, %p663_p5 }
  0x30   : > { %p544_p11 = por %p543_p10, %p542_p9 }
  0x31   : > { %p540_p8 = pneg %p539_p7 }
  0x32   : > { %p546_p13 = por %p545_p12, %p544_p11 }
  0x34   : > { %p547_p0 = pnand %p546_p13, %p540_p8 }
  0x36   : > { %550 = shalt.err (!%p547_p0)
}
  0x37   : > { %s588_s14 = smov 128   ;;  %s589_s15 = smov 8  }
  0x38   : > { %482 = dma.vmem_to_hbm [thread:$0]  (%p663_p5), %s759_s13, 1024, %s764_s17, %s768_s25, %s588_s14, %s588_s14, %s589_s15  }
  0x39 PF: > { %p488_p1 = scmp.ge.s32.totalorder %s585_s24, 2  ;;  %s404_s16 = sand.u32 1, %s573_s21  }
  0x3a   : > { %s405_s18 = scalar_lea.sflag [#allocation3], %s404_s16 }
  0x3b   : > { %p485_p2 = pnand %p488_p1, %p667_p6 }
  0x3d   : > { %568 = dma.done.wait (!%p485_p2), %s405_s18, 1024  }
  0x3e   : > { %570 = vsyncadd (!%p485_p2), %s405_s18, 4294966272  ;;  %p16_p3 = scmp.ge.s32.totalorder %s650_s27, 4   ;;  %s818_s21 = smov %s577_s22 }
  0x3f   : > { %s819_s22 = smov %s581_s23  ;;  %s820_s23 = smov %s661_s30 }
  0x40   : > { %s821_s24 = smov %s650_s27  ;;  %18 = sbr.rel (!%p16_p3) target bundleno = 3 (0x3), region = 82 }
  0x47   :  { %410 = vsyncpa [#allocation3], 1 }
  0x48   :  { %412 = vsyncpa [#allocation3 + $0x1], 1 }

// kernel: bottleneck_forward.6
= control target key start
LH: loop header
LB: loop body
LE: loop exit
PB: predicated region body
PF: predicated region fallthrough
CT: control target
= control target key end

     0   :  { %s2639_s18 = smov 0   ;;  %s3002_s0 = inlined_call_operand.vmem [shape: f32[2,16,16,128], index: 0, kind: input, shape index: {}]   ;;  %s3003_s1 = inlined_call_operand.vmem [shape: f32[1,128], index: 1, kind: input, shape index: {}]   ;;  %s3004_s2 = inlined_call_operand.vmem [shape: f32[1,128], index: 2, kind: input, shape index: {}]   ;;  %s3005_s3 = inlined_call_operand.vmem [shape: bf16[3,3,128,128], index: 3, kind: input, shape index: {}]   ;;  %s3006_s4 = inlined_call_operand.vmem [shape: f32[128,128], index: 4, kind: output, shape index: {0}]   ;;  %s3007_s5 = inlined_call_operand.vmem [shape: f32[2,2,128], index: 5, kind: output, shape index: {1}]  }
   0x1 LB: > { %s2645_s19 = sadd.s32 4294967295, %s2606_s18   ;;  %p2032_p0 = scmp.ge.s32.totalorder %s2606_s18, 1  ;;  %s2606_s18 = sphi %s2639_s18, %s16_s18  }
   0x2   : > { %p190_p1 = scmp.lt.s32.totalorder %s2606_s18, 3 }
   0x4   : > { %p191_p2 = pnand %p2032_p0, %p190_p1 }
   0x5   : > { %v2528_v0 = vld [vmem:[%s3005_s3 + $0x40] sm:$0xff] (!%p191_p2)   ;;  %v2530_v2 = vld [vmem:[%s3005_s3 + $0x48] sm:$0xff] (!%p191_p2)   ;;  %p222_p3 = scmp.lt.s32.totalorder (!%p191_p2), %s2645_s19, 1  ;;  %v2608_v3 = vmov (!%p191_p2), 0.0   ;;  %v2532_v5 = vld [vmem:[%s3005_s3 + $0x50] sm:$0xff] (!%p191_p2)   ;;  %s2035_s20 = sshll.u32 (!%p191_p2), %s2645_s19, 3 }
   0x6   : > { %194 = sbr.rel (%p191_p2) target bundleno = 417 (0x1a1), region = 36  ;;  %v2529_v1 = vld [vmem:[%s3005_s3 + $0x100] sm:$0xff] (!%p191_p2)   ;;  %2223 = vmatprep.subr.bf16.mxu1 (!%p191_p2), %v2528_v0  ;;  %380 = vst [vmem:[#allocation2] sm:$0xff] (!%p191_p2), %v2608_v3  ;;  %381 = vst [vmem:[#allocation2 + $0x8] sm:$0xff] (!%p191_p2), %v2608_v3  ;;  %v2531_v4 = vld [vmem:[%s3005_s3 + $0x108] sm:$0xff] (!%p191_p2)   ;;  %p228_p4 = scmp.lt.s32.totalorder (!%p191_p2), %s2035_s20, 15 }
   0x7   : > { %382 = vst [vmem:[#allocation2 + $0x10] sm:$0x3] (!%p191_p2), %v2608_v3  ;;  %388 = vst [vmem:[#allocation2 + $0x18] sm:$0x1] (!%p191_p2), %v2608_v3  ;;  %2319 = vmatprep.subr.bf16.mxu0 (!%p191_p2), %v2529_v1  ;;  %2224 = vmatpush3.bf16.msra.mxu1 (!%p191_p2), %v2528_v0  ;;  %v2533_v6 = vld [vmem:[%s3005_s3 + $0x110] sm:$0xff] (!%p191_p2)   ;;  %v2534_v7 = vld [vmem:[%s3005_s3 + $0x58] sm:$0xff] (!%p191_p2)  }
   0x8   : > { %389 = vst [vmem:[#allocation2 + $0x30] sm:$0x1] (!%p191_p2), %v2608_v3  ;;  %390 = vst [vmem:[#allocation2 + $0x48] sm:$0x1] (!%p191_p2), %v2608_v3  ;;  %2320 = vmatpush3.bf16.msra.mxu0 (!%p191_p2), %v2529_v1  ;;  %2225 = vmatprep.subr.bf16.mxu1 (!%p191_p2), %v2530_v2  ;;  %v2535_v8 = vld [vmem:[%s3005_s3 + $0x118] sm:$0xff] (!%p191_p2)   ;;  %v2536_v9 = vld [vmem:[%s3005_s3 + $0x60] sm:$0xff] (!%p191_p2)  }
   0x9   : > { %391 = vst [vmem:[#allocation2 + $0x60] sm:$0x1] (!%p191_p2), %v2608_v3  ;;  %392 = vst [vmem:[#allocation2 + $0x78] sm:$0x1] (!%p191_p2), %v2608_v3  ;;  %2321 = vmatprep.subr.bf16.mxu0 (!%p191_p2), %v2531_v4  ;;  %v2537_v10 = vld [vmem:[%s3005_s3 + $0x120] sm:$0xff] (!%p191_p2)   ;;  %v2538_v11 = vld [vmem:[%s3005_s3 + $0x68] sm:$0xff] (!%p191_p2)  }
   0xa   : > { %393 = vst [vmem:[#allocation2 + $0x90] sm:$0x1] (!%p191_p2), %v2608_v3  ;;  %394 = vst [vmem:[#allocation2 + $0xa8] sm:$0x1] (!%p191_p2), %v2608_v3  ;;  %v2697_v12 = vld [vmem:[%s3003_s1] ss:$0 sm:$0xff] (!%p191_p2) }
   0xb   : > { %395 = vst [vmem:[#allocation2 + $0xc0] sm:$0x1] (!%p191_p2), %v2608_v3  ;;  %396 = vst [vmem:[#allocation2 + $0xd8] sm:$0x1] (!%p191_p2), %v2608_v3  ;;  %2226 = vmatpush3.bf16.msra.mxu1 (!%p191_p2), %v2530_v2  ;;  %v2702_v13 = vld [vmem:[%s3004_s2] ss:$0 sm:$0xff] (!%p191_p2) }
   0xc   : > { %397 = vst [vmem:[#allocation2 + $0xf0] sm:$0x1] (!%p191_p2), %v2608_v3  ;;  %398 = vst [vmem:[#allocation2 + $0x108] sm:$0x1] (!%p191_p2), %v2608_v3  ;;  %2322 = vmatpush3.bf16.msra.mxu0 (!%p191_p2), %v2531_v4  ;;  %2227 = vmatprep.subr.bf16.mxu1 (!%p191_p2), %v2532_v5  ;;  %v2539_v15 = vld [vmem:[%s3005_s3 + $0x128] sm:$0xff] (!%p191_p2)   ;;  %v2540_v18 = vld [vmem:[%s3005_s3 + $0x70] sm:$0xff] (!%p191_p2)  }
   0xd   : > { %399 = vst [vmem:[#allocation2 + $0x120] sm:$0x1] %v2608_v3  ;;  %400 = vst [vmem:[#allocation2 + $0x138] sm:$0x1] %v2608_v3  ;;  %s2671_s7 = scalar_select %p222_p3, %s2645_s19, 1  ;;  %2323 = vmatprep.subr.bf16.mxu0 %v2533_v6  ;;  %v2541_v26 = vld [vmem:[%s3005_s3 + $0x130] sm:$0xff]  }
   0xe   : > { %401 = vst [vmem:[#allocation2 + $0x150] sm:$0x1] %v2608_v3  ;;  %402 = vst [vmem:[#allocation2 + $0x168] sm:$0x1] %v2608_v3  ;;  %v2542_v48 = vld [vmem:[%s3005_s3 + $0x78] sm:$0xff]   ;;  %v2544_v4 = vld [vmem:[%s3005_s3] sm:$0xff]  }
   0xf   : > { %403 = vst [vmem:[#allocation2 + $0x180] sm:$0x1] %v2608_v3  ;;  %387 = vst [vmem:[#allocation2] sm:$0x1] %v2608_v3  ;;  %s2114_s12 = sshll.u32 %s2671_s7, 8  ;;  %2228 = vmatpush3.bf16.msra.mxu1 %v2532_v5  ;;  %v2543_v54 = vld [vmem:[%s3005_s3 + $0x138] sm:$0xff]  }
  0x10   : > { %2324 = vmatpush3.bf16.msra.mxu0 %v2533_v6  ;;  %2229 = vmatprep.subr.bf16.mxu1 %v2534_v7  ;;  %s2689_s21 = scalar_lea.vmem %s3002_s0, %s2114_s12  ;;  %v620_v63 = vld [vmem:[#allocation2 + $0x1] ss:$2 sm:$0xff]  ;;  %s3009_s20 = smov (!%p228_p4, %s2035_s20), 15 }
  0x11   : > { %2325 = vmatprep.subr.bf16.mxu0 %v2535_v8  ;;  %v242_v14 = vld [vmem:[%s2689_s21 + $0x10] sm:$0xff]  ;;  %v243_v16 = vld [vmem:[%s2689_s21 + $0x18] sm:$0xff]  ;;  %v240_v20 = vld [vmem:[%s2689_s21] sm:$0xff]  ;;  %s2036_s22 = sshll.u32 %s3009_s20, 3  ;;  %s2037_s19 = sshll.u32 %s2671_s7, 1 }
  0x12   : > { %v280_v17 = vmul.f32 %v2697_v12, %v242_v14  ;;  %v281_v19 = vmul.f32 %v2697_v12, %v243_v16  ;;  %v241_v22 = vld [vmem:[%s2689_s21 + $0x8] sm:$0xff]  ;;  %v244_v23 = vld [vmem:[%s2689_s21 + $0x20] sm:$0xff]  ;;  %v278_v25 = vmul.f32 %v2697_v12, %v240_v20  ;;  %v246_v33 = vld [vmem:[%s2689_s21 + $0x30] sm:$0xff]  ;;  %s231_s25 = scalar_lea.vmem %s3006_s4, %s2036_s22  ;;  %s236_s28 = scalar_lea.vmem %s3007_s5, %s2037_s19 }
  0x13   : > { %2230 = vmatpush3.bf16.msra.mxu1 %v2534_v7  ;;  %v245_v24 = vld [vmem:[%s2689_s21 + $0x28] sm:$0xff]  ;;  %v279_v28 = vmul.f32 %v2697_v12, %v241_v22  ;;  %v282_v29 = vmul.f32 %v2697_v12, %v244_v23  ;;  %v247_v34 = vld [vmem:[%s2689_s21 + $0x38] sm:$0xff]  ;;  %v250_v35 = vld [vmem:[%s2689_s21 + $0x50] sm:$0xff]  ;;  %v284_v40 = vmul.f32 %v2697_v12, %v246_v33 }
  0x14   : > { %2326 = vmatpush3.bf16.msra.mxu0 %v2535_v8  ;;  %2231 = vmatprep.subr.bf16.mxu1 %v2536_v9  ;;  %v318_v21 = vadd.f32 %v2702_v13, %v280_v17  ;;  %v319_v27 = vadd.f32 %v2702_v13, %v281_v19  ;;  %v283_v31 = vmul.f32 %v2697_v12, %v245_v24  ;;  %v251_v39 = vld [vmem:[%s2689_s21 + $0x58] sm:$0xff]  ;;  %v248_v41 = vld [vmem:[%s2689_s21 + $0x40] sm:$0xff]  ;;  %v249_v46 = vld [vmem:[%s2689_s21 + $0x48] sm:$0xff] }
  0x15   : > { %2327 = vmatprep.subr.bf16.mxu0 %v2537_v10  ;;  %v316_v32 = vadd.f32 %v2702_v13, %v278_v25  ;;  %v317_v37 = vadd.f32 %v2702_v13, %v279_v28  ;;  %v320_v38 = vadd.f32 %v2702_v13, %v282_v29  ;;  %v285_v44 = vmul.f32 %v2697_v12, %v247_v34  ;;  %v252_v47 = vld [vmem:[%s2689_s21 + $0x60] sm:$0xff]  ;;  %v253_v53 = vld [vmem:[%s2689_s21 + $0x68] sm:$0xff]  ;;  %v255_v22 = vld [vmem:[%s2689_s21 + $0x78] sm:$0xff] }
  0x16   : > { %v350_v30 = vmax.f32 %v318_v21, 0.0  ;;  %v351_v36 = vmax.f32 %v319_v27, 0.0  ;;  %v321_v42 = vadd.f32 %v2702_v13, %v283_v31  ;;  %v288_v45 = vmul.f32 %v2697_v12, %v250_v35  ;;  %v2766_v8 = vld [vmem:[%s3005_s3 + $0x140] sm:$0xff]   ;;  %v254_v21 = vld [vmem:[%s2689_s21 + $0x70] sm:$0xff]  ;;  %v259_v25 = vld [vmem:[%s2689_s21 + $0x98] sm:$0xff] }
  0x17   : > { %2232 = vmatpush3.bf16.msra.mxu1 %v2536_v9  ;;  %v348_v43 = vmax.f32 %v316_v32, 0.0  ;;  %v349_v49 = vmax.f32 %v317_v37, 0.0  ;;  %v352_v50 = vmax.f32 %v320_v38, 0.0  ;;  %v289_v51 = vmul.f32 %v2697_v12, %v251_v39  ;;  %v258_v24 = vld [vmem:[%s2689_s21 + $0x90] sm:$0xff]  ;;  %v2546_v32 = vld [vmem:[%s3005_s3 + $0x8] sm:$0xff]   ;;  %v256_v35 = vld [vmem:[%s2689_s21 + $0x80] sm:$0xff] }
  0x18   : > { %2328 = vmatpush3.bf16.msra.mxu0 %v2537_v10  ;;  %2233 = vmatprep.subr.bf16.mxu1 %v2538_v11  ;;  %426 = vst [vmem:[#allocation2 + $0x31] sm:$0xff] %v350_v30  ;;  %427 = vst [vmem:[#allocation2 + $0x39] sm:$0xff] %v351_v36  ;;  %v322_v52 = vadd.f32 %v2702_v13, %v284_v40  ;;  %v353_v55 = vmax.f32 %v321_v42, 0.0  ;;  %v323_v56 = vadd.f32 %v2702_v13, %v285_v44  ;;  %v257_v36 = vld [vmem:[%s2689_s21 + $0x88] sm:$0xff] }
  0x19   : > { %2329 = vmatprep.subr.bf16.mxu0 %v2539_v15  ;;  %424 = vst [vmem:[#allocation2 + $0x19] sm:$0xff] %v348_v43  ;;  %v326_v57 = vadd.f32 %v2702_v13, %v288_v45  ;;  %v286_v58 = vmul.f32 %v2697_v12, %v248_v41  ;;  %425 = vst [vmem:[#allocation2 + $0x21] sm:$0xff] %v349_v49  ;;  %v327_v59 = vadd.f32 %v2702_v13, %v289_v51  ;;  %v2788_v38 = vld [vmem:[%s3005_s3 + $0x148] sm:$0xff]   ;;  %v260_v41 = vld [vmem:[%s2689_s21 + $0xa0] sm:$0xff] }
  0x1a   : > { %428 = vst [vmem:[#allocation2 + $0x49] sm:$0xff] %v352_v50  ;;  %v354_v60 = vmax.f32 %v322_v52, 0.0  ;;  %v287_v61 = vmul.f32 %v2697_v12, %v249_v46  ;;  %v290_v62 = vmul.f32 %v2697_v12, %v252_v47  ;;  %429 = vst [vmem:[#allocation2 + $0x51] sm:$0xff] %v353_v55  ;;  %v355_v0 = vmax.f32 %v323_v56, 0.0  ;;  %v261_v42 = vld [vmem:[%s2689_s21 + $0xa8] sm:$0xff]  ;;  %v2548_v51 = vld [vmem:[%s3005_s3 + $0x10] sm:$0xff]  }
  0x1b   : > { %2234 = vmatpush3.bf16.msra.mxu1 %v2538_v11  ;;  %v358_v1 = vmax.f32 %v326_v57, 0.0  ;;  %v291_v2 = vmul.f32 %v2697_v12, %v253_v53  ;;  %v324_v3 = vadd.f32 %v2702_v13, %v286_v58  ;;  %v359_v5 = vmax.f32 %v327_v59, 0.0  ;;  %v262_v55 = vld [vmem:[%s2689_s21 + $0xb0] sm:$0xff]  ;;  %v263_v59 = vld [vmem:[%s2689_s21 + $0xb8] sm:$0xff] }
  0x1c   : > { %2330 = vmatpush3.bf16.msra.mxu0 %v2539_v15  ;;  %2235 = vmatprep.subr.bf16.mxu1 %v2540_v18  ;;  %430 = vst [vmem:[#allocation2 + $0x61] sm:$0xff] %v354_v60  ;;  %v325_v6 = vadd.f32 %v2702_v13, %v287_v61  ;;  %v328_v7 = vadd.f32 %v2702_v13, %v290_v62  ;;  %431 = vst [vmem:[#allocation2 + $0x69] sm:$0xff] %v355_v0  ;;  %v266_v60 = vld [vmem:[%s2689_s21 + $0xd0] sm:$0xff]  ;;  %v267_v61 = vld [vmem:[%s2689_s21 + $0xd8] sm:$0xff] }
  0x1d   : > { %2331 = vmatprep.subr.bf16.mxu0 %v2541_v26  ;;  %434 = vst [vmem:[#allocation2 + $0x91] sm:$0xff] %v358_v1  ;;  %v329_v9 = vadd.f32 %v2702_v13, %v291_v2  ;;  %v356_v10 = vmax.f32 %v324_v3, 0.0  ;;  %435 = vst [vmem:[#allocation2 + $0x99] sm:$0xff] %v359_v5  ;;  %v293_v27 = vmul.f32 %v2697_v12, %v255_v22  ;;  %v264_v3 = vld [vmem:[%s2689_s21 + $0xc0] sm:$0xff] }
  0x1e   : > { %v357_v11 = vmax.f32 %v325_v6, 0.0  ;;  %v360_v14 = vmax.f32 %v328_v7, 0.0  ;;  %v296_v29 = vmul.f32 %v2697_v12, %v258_v24  ;;  %v297_v30 = vmul.f32 %v2697_v12, %v259_v25  ;;  %v268_v5 = vld [vmem:[%s2689_s21 + $0xe0] sm:$0xff] }
  0x1f   : > { %2236 = vmatpush3.bf16.msra.mxu1 %v2540_v18  ;;  %v622_v15 = vld [vmem:[#allocation2 + $0x31] ss:$2 sm:$0xff]  ;;  %v361_v16 = vmax.f32 %v329_v9, 0.0  ;;  %432 = vst [vmem:[#allocation2 + $0x79] sm:$0xff] %v356_v10  ;;  %v331_v34 = vadd.f32 %v2702_v13, %v293_v27  ;;  %v294_v43 = vmul.f32 %v2697_v12, %v256_v35  ;;  %v295_v44 = vmul.f32 %v2697_v12, %v257_v36 }
  0x20   : > { %2332 = vmatpush3.bf16.msra.mxu0 %v2541_v26  ;;  %2237 = vmatprep.subr.bf16.mxu1 %v2542_v48  ;;  %v635_v17 = vpack.c.bf16 %v622_v15, %v620_v63  ;;  %433 = vst [vmem:[#allocation2 + $0x81] sm:$0xff] %v357_v11  ;;  %436 = vst [vmem:[#allocation2 + $0xa9] sm:$0xff] %v360_v14  ;;  %v1147_v18 = vld [vmem:[#allocation2 + $0x19] ss:$2 sm:$0xff]  ;;  %v292_v26 = vmul.f32 %v2697_v12, %v254_v21  ;;  %v269_v11 = vld [vmem:[%s2689_s21 + $0xe8] sm:$0xff] }
  0x21   : > { %2333 = vmatprep.subr.bf16.mxu0 %v2543_v54  ;;  %437 = vst [vmem:[#allocation2 + $0xb1] sm:$0xff] %v361_v16  ;;  %v1149_v19 = vld [vmem:[#allocation2 + $0x49] ss:$2 sm:$0xff]  ;;  %v334_v39 = vadd.f32 %v2702_v13, %v296_v29  ;;  %v335_v40 = vadd.f32 %v2702_v13, %v297_v30  ;;  %v363_v47 = vmax.f32 %v331_v34, 0.0  ;;  %v299_v49 = vmul.f32 %v2697_v12, %v261_v42  ;;  %v2551_v29 = vld [vmem:[%s3005_s3 + $0x158] sm:$0xff]  }
  0x22   : > { %2239 = vmatprep.mubr.bf16.mxu1 %v635_v17  ;;  %v1162_v20 = vpack.c.bf16 %v1149_v19, %v1147_v18  ;;  %v330_v33 = vadd.f32 %v2702_v13, %v292_v26  ;;  %v333_v56 = vadd.f32 %v2702_v13, %v295_v44  ;;  %v300_v62 = vmul.f32 %v2697_v12, %v262_v55  ;;  %v2549_v14 = vld [vmem:[%s3005_s3 + $0x150] sm:$0xff]   ;;  %v2550_v17 = vld [vmem:[%s3005_s3 + $0x18] sm:$0xff]  }
  0x23   : > { %2238 = vmatpush3.bf16.msra.mxu1 %v2542_v48  ;;  %v624_v23 = vld [vmem:[#allocation2 + $0x61] ss:$2 sm:$0xff]  ;;  %v298_v48 = vmul.f32 %v2697_v12, %v260_v41  ;;  %v366_v52 = vmax.f32 %v334_v39, 0.0  ;;  %v367_v53 = vmax.f32 %v335_v40, 0.0  ;;  %439 = vst [vmem:[#allocation2 + $0xc9] sm:$0xff] %v363_v47  ;;  %v337_v58 = vadd.f32 %v2702_v13, %v299_v49 }
  0x24   : > { %2334 = vmatpush3.bf16.msra.mxu0 %v2543_v54  ;;  %2247 = vmatprep.subr.bf16.mxu1 %v2544_v4  ;;  %v626_v28 = vld [vmem:[#allocation2 + $0x91] ss:$2 sm:$0xff]  ;;  %v362_v46 = vmax.f32 %v330_v33, 0.0  ;;  %v332_v54 = vadd.f32 %v2702_v13, %v294_v43  ;;  %v301_v0 = vmul.f32 %v2697_v12, %v263_v59  ;;  %v304_v1 = vmul.f32 %v2697_v12, %v266_v60  ;;  %v2554_v40 = vld [vmem:[%s3005_s3 + $0x28] sm:$0xff]   ;;  %v602_v42 = vld [vmem:[#allocation2 + $0x30] ss:$2 sm:$0xff] }
  0x25   : > { %2343 = vmatprep.subr.bf16.mxu0 %v2766_v8  ;;  %2335 = vmatprep.mubr.bf16.mxu0 %v1162_v20  ;;  %v636_v31 = vpack.c.bf16 %v626_v28, %v624_v23  ;;  %v336_v57 = vadd.f32 %v2702_v13, %v298_v48  ;;  %442 = vst [vmem:[#allocation2 + $0xf1] sm:$0xff] %v366_v52  ;;  %443 = vst [vmem:[#allocation2 + $0xf9] sm:$0xff] %v367_v53  ;;  %v365_v6 = vmax.f32 %v333_v56, 0.0  ;;  %v600_v41 = vld [vmem:[#allocation2] ss:$2 sm:$0xff]  ;;  %v2556_v53 = vld [vmem:[%s3005_s3 + $0x30] sm:$0xff]  }
  0x26   : > { %438 = vst [vmem:[#allocation2 + $0xc1] sm:$0xff] %v362_v46  ;;  %v364_v63 = vmax.f32 %v332_v54, 0.0  ;;  %v305_v2 = vmul.f32 %v2697_v12, %v267_v61  ;;  %v369_v9 = vmax.f32 %v337_v58, 0.0  ;;  %v338_v10 = vadd.f32 %v2702_v13, %v300_v62  ;;  %v2555_v46 = vld [vmem:[%s3005_s3 + $0x168] sm:$0xff]   ;;  %v2558_v59 = vld [vmem:[%s3005_s3 + $0x38] sm:$0xff]  }
  0x27   : > { %v1151_v37 = vld [vmem:[#allocation2 + $0x79] ss:$2 sm:$0xff]  ;;  %2240 = vmatmul.mubr.bf16.vlgmr.msra.gmra.mrb[0].mxu1 %v636_v31  ;;  %v368_v7 = vmax.f32 %v336_v57, 0.0  ;;  %v339_v15 = vadd.f32 %v2702_v13, %v301_v0  ;;  %v342_v16 = vadd.f32 %v2702_v13, %v304_v1  ;;  %441 = vst [vmem:[#allocation2 + $0xe1] sm:$0xff] %v365_v6  ;;  %v302_v19 = vmul.f32 %v2697_v12, %v264_v3  ;;  %v1290_v52 = vld [vmem:[#allocation2 + $0x4a] ss:$2 sm:$0xff] }
  0x28   : > { %v1153_v45 = vld [vmem:[#allocation2 + $0xa9] ss:$2 sm:$0xff]  ;;  %2248 = vmatpush3.bf16.msra.mxu1 %v2544_v4  ;;  %440 = vst [vmem:[#allocation2 + $0xd9] sm:$0xff] %v364_v63  ;;  %445 = vst [vmem:[#allocation2 + $0x111] sm:$0xff] %v369_v9  ;;  %v370_v18 = vmax.f32 %v338_v10, 0.0  ;;  %v306_v21 = vmul.f32 %v2697_v12, %v268_v5  ;;  %v307_v25 = vmul.f32 %v2697_v12, %v269_v11  ;;  %v2559_v60 = vld [vmem:[%s3005_s3 + $0x178] sm:$0xff]  }
  0x29   : > { %v1163_v50 = vpack.c.bf16 %v1153_v45, %v1151_v37  ;;  %2249 = vmatprep.subr.bf16.mxu1 %v2546_v32  ;;  %v265_v4 = vld [vmem:[%s2689_s21 + $0xc8] sm:$0xff]  ;;  %444 = vst [vmem:[#allocation2 + $0x109] sm:$0xff] %v368_v7  ;;  %v371_v22 = vmax.f32 %v339_v15, 0.0  ;;  %v374_v23 = vmax.f32 %v342_v16, 0.0  ;;  %v340_v26 = vadd.f32 %v2702_v13, %v302_v19  ;;  %v2553_v37 = vld [vmem:[%s3005_s3 + $0x160] sm:$0xff]   ;;  %v2557_v57 = vld [vmem:[%s3005_s3 + $0x170] sm:$0xff]  }
  0x2a   : > { %v303_v20 = vmul.f32 %v2697_v12, %v265_v4  ;;  %446 = vst [vmem:[#allocation2 + $0x121] sm:$0xff] %v370_v18  ;;  %v344_v28 = vadd.f32 %v2702_v13, %v306_v21  ;;  %v345_v31 = vadd.f32 %v2702_v13, %v307_v25  ;;  %v615_v49 = vpack.c.bf16 %v602_v42, %v600_v41  ;;  %v604_v61 = vld [vmem:[#allocation2 + $0x60] ss:$2 sm:$0xff]  ;;  %v606_v62 = vld [vmem:[#allocation2 + $0x90] ss:$2 sm:$0xff] }
  0x2b   : > { %2336 = vmatmul.mubr.bf16.vlgmr.msra.gmra.mrb[0].mxu0 %v1163_v50  ;;  %447 = vst [vmem:[#allocation2 + $0x129] sm:$0xff] %v371_v22  ;;  %450 = vst [vmem:[#allocation2 + $0x151] sm:$0xff] %v374_v23  ;;  %v372_v34 = vmax.f32 %v340_v26, 0.0  ;;  %v1288_v50 = vld [vmem:[#allocation2 + $0x1a] ss:$2 sm:$0xff]  ;;  %v616_v3 = vpack.c.bf16 %v606_v62, %v604_v61  ;;  %v2565_v19 = vld [vmem:[%s3005_s3 + $0x190] sm:$0xff]  }
  0x2c   : > { %2344 = vmatpush3.bf16.msra.mxu0 %v2766_v8  ;;  %2250 = vmatpush3.bf16.msra.mxu1 %v2546_v32  ;;  %v343_v8 = vadd.f32 %v2702_v13, %v305_v2  ;;  %v341_v27 = vadd.f32 %v2702_v13, %v303_v20  ;;  %v2552_v32 = vld [vmem:[%s3005_s3 + $0x20] sm:$0xff]   ;;  %v630_v33 = vld [vmem:[#allocation2 + $0xf1] ss:$2 sm:$0xff]  ;;  %v376_v36 = vmax.f32 %v344_v28, 0.0  ;;  %v377_v39 = vmax.f32 %v345_v31, 0.0  ;;  %v2562_v9 = vld [vmem:[%s3005_s3 + $0x88] sm:$0xff]  }
  0x2d   : > { %2345 = vmatprep.subr.bf16.mxu0 %v2788_v38  ;;  %2251 = vmatprep.subr.bf16.mxu1 %v2548_v51  ;;  %v628_v30 = vld [vmem:[#allocation2 + $0xc1] ss:$2 sm:$0xff]  ;;  %448 = vst [vmem:[#allocation2 + $0x139] sm:$0xff] %v372_v34  ;;  %v1303_v56 = vpack.c.bf16 %v1290_v52, %v1288_v50  ;;  %v608_v0 = vld [vmem:[#allocation2 + $0xc0] ss:$2 sm:$0xff]  ;;  %v2566_v26 = vld [vmem:[%s3005_s3 + $0x98] sm:$0xff]  }
  0x2e   : > { %v375_v24 = vmax.f32 %v343_v8, 0.0  ;;  %v373_v35 = vmax.f32 %v341_v27, 0.0  ;;  %452 = vst [vmem:[#allocation2 + $0x169] sm:$0xff] %v376_v36  ;;  %453 = vst [vmem:[#allocation2 + $0x171] sm:$0xff] %v377_v39  ;;  %v2560_v63 = vld [vmem:[%s3005_s3 + $0x80] sm:$0xff]   ;;  %v2571_v34 = vld [vmem:[%s3005_s3 + $0x1a8] sm:$0xff]  }
  0x2f   : > { %v1155_v43 = vld [vmem:[#allocation2 + $0xd9] ss:$2 sm:$0xff]  ;;  %v610_v2 = vld [vmem:[#allocation2 + $0xf0] ss:$2 sm:$0xff]  ;;  %v1431_v25 = vld [vmem:[#allocation2 + $0x60] ss:$2 sm:$0xff] }
  0x30   : > { %2346 = vmatpush3.bf16.msra.mxu0 %v2788_v38  ;;  %2252 = vmatpush3.bf16.msra.mxu1 %v2548_v51  ;;  %451 = vst [vmem:[#allocation2 + $0x159] sm:$0xff] %v375_v24  ;;  %v637_v38 = vpack.c.bf16 %v630_v33, %v628_v30  ;;  %449 = vst [vmem:[#allocation2 + $0x141] sm:$0xff] %v373_v35  ;;  %v1157_v44 = vld [vmem:[#allocation2 + $0x109] ss:$2 sm:$0xff]  ;;  %v2561_v1 = vld [vmem:[%s3005_s3 + $0x180] sm:$0xff]   ;;  %v617_v10 = vpack.c.bf16 %v610_v2, %v608_v0 }
  0x31   : > { %2347 = vmatprep.subr.bf16.mxu0 %v2549_v14  ;;  %2253 = vmatprep.subr.bf16.mxu1 %v2550_v17  ;;  %v1164_v45 = vpack.c.bf16 %v1157_v44, %v1155_v43  ;;  %v1292_v4 = vld [vmem:[#allocation2 + $0x7a] ss:$2 sm:$0xff]  ;;  %v1294_v5 = vld [vmem:[#allocation2 + $0xaa] ss:$2 sm:$0xff] }
  0x32   : > { %2243 = vmatprep.mubr.bf16.mxu1 %v637_v38  ;;  %v632_v47 = vld [vmem:[#allocation2 + $0x121] ss:$2 sm:$0xff]  ;;  %v1296_v6 = vld [vmem:[#allocation2 + $0xda] ss:$2 sm:$0xff]  ;;  %v1298_v7 = vld [vmem:[#allocation2 + $0x10a] ss:$2 sm:$0xff]  ;;  %v1304_v11 = vpack.c.bf16 %v1294_v5, %v1292_v4 }
  0x33   : > { %2339 = vmatprep.mubr.bf16.mxu0 %v1164_v45  ;;  %v1305_v15 = vpack.c.bf16 %v1298_v7, %v1296_v6  ;;  %v612_v16 = vld [vmem:[#allocation2 + $0x120] ss:$2 sm:$0xff]  ;;  %v1429_v24 = vld [vmem:[#allocation2 + $0x30] ss:$2 sm:$0xff]  ;;  %v1570_v6 = vld [vmem:[#allocation2 + $0x31] ss:$2 sm:$0xff] }
  0x34   : > { %2348 = vmatpush3.bf16.msra.mxu0 %v2549_v14  ;;  %2254 = vmatpush3.bf16.msra.mxu1 %v2550_v17  ;;  %v2563_v14 = vld [vmem:[%s3005_s3 + $0x188] sm:$0xff]   ;;  %v2564_v17 = vld [vmem:[%s3005_s3 + $0x90] sm:$0xff]   ;;  %v2567_v30 = vld [vmem:[%s3005_s3 + $0x198] sm:$0xff]  }
  0x35   : > { %2349 = vmatprep.subr.bf16.mxu0 %v2551_v29  ;;  %2255 = vmatprep.subr.bf16.mxu1 %v2552_v32  ;;  %v1161_v55 = vld [vmem:[#allocation2 + $0x169] ss:$2 sm:$0xff]  ;;  %v1302_v20 = vld [vmem:[#allocation2 + $0x16a] ss:$2 sm:$0xff]  ;;  %v2568_v31 = vld [vmem:[%s3005_s3 + $0xa0] sm:$0xff]  }
  0x36   : > { %v866_v21 = vld [vmem:[#allocation2 + $0x2] ss:$2 sm:$0xff]  ;;  %v868_v22 = vld [vmem:[#allocation2 + $0x32] ss:$2 sm:$0xff]  ;;  %v1572_v7 = vld [vmem:[#allocation2 + $0x61] ss:$2 sm:$0xff] }
  0x37   : > { %v634_v48 = vld [vmem:[#allocation2 + $0x151] ss:$2 sm:$0xff]  ;;  %v614_v8 = vld [vmem:[#allocation2 + $0x150] ss:$2 sm:$0xff]  ;;  %v881_v27 = vpack.c.bf16 %v868_v22, %v866_v21  ;;  %v2570_v33 = vld [vmem:[%s3005_s3 + $0xa8] sm:$0xff]  }
  0x38   : > { %2350 = vmatpush3.bf16.msra.mxu0 %v2551_v29  ;;  %2256 = vmatpush3.bf16.msra.mxu1 %v2552_v32  ;;  %v638_v51 = vpack.c.bf16 %v634_v48, %v632_v47  ;;  %v1159_v54 = vld [vmem:[#allocation2 + $0x139] ss:$2 sm:$0xff]  ;;  %v1300_v18 = vld [vmem:[#allocation2 + $0x13a] ss:$2 sm:$0xff]  ;;  %v618_v23 = vpack.c.bf16 %v614_v8, %v612_v16  ;;  %v1444_v29 = vpack.c.bf16 %v1431_v25, %v1429_v24  ;;  %v270_v35 = vld [vmem:[%s2689_s21 + $0xf0] sm:$0xff] }
  0x39   : > { %2351 = vmatprep.subr.bf16.mxu0 %v2553_v37  ;;  %2257 = vmatprep.subr.bf16.mxu1 %v2554_v40  ;;  %v1165_v58 = vpack.c.bf16 %v1161_v55, %v1159_v54  ;;  %v1306_v28 = vpack.c.bf16 %v1302_v20, %v1300_v18  ;;  %v2569_v32 = vld [vmem:[%s3005_s3 + $0x1a0] sm:$0xff]   ;;  %v271_v36 = vld [vmem:[%s2689_s21 + $0xf8] sm:$0xff]  ;;  %v308_v38 = vmul.f32 %v2697_v12, %v270_v35  ;;  %v2573_v42 = vld [vmem:[%s3005_s3 + $0x1b0] sm:$0xff]  }
  0x3a   : > { %2244 = vmatmul.mubr.bf16.gmra.mrb[4].mxu1 %v638_v51  ;;  %v309_v39 = vmul.f32 %v2697_v12, %v271_v36  ;;  %v2574_v43 = vld [vmem:[%s3005_s3 + $0xb8] sm:$0xff]   ;;  %v2576_v47 = vld [vmem:[%s3005_s3 + $0xc0] sm:$0xff]   ;;  %v2581_v5 = vld [vmem:[%s3005_s3 + $0x1d0] sm:$0xff]  }
  0x3b   : > { %2263 = vmatprep.mubr.bf16.mxu1 %v615_v49  ;;  %2340 = vmatmul.mubr.bf16.gmra.mrb[4].mxu0 %v1165_v58  ;;  %v2575_v12 = vld [vmem:[%s3005_s3 + $0x1b8] sm:$0xff]   ;;  %v2577_v49 = vld [vmem:[%s3005_s3 + $0x1c0] sm:$0xff]   ;;  %v2587_v18 = vld [vmem:[%s3005_s3 + $0x1e8] sm:$0xff]  }
  0x3c   : > { %2352 = vmatpush3.bf16.msra.mxu0 %v2553_v37  ;;  %2258 = vmatpush3.bf16.msra.mxu1 %v2554_v40  ;;  %v2572_v37 = vld [vmem:[%s3005_s3 + $0xb0] sm:$0xff]   ;;  %v346_v40 = vadd.f32 %v2702_v13, %v308_v38  ;;  %v347_v41 = vadd.f32 %v2702_v13, %v309_v39  ;;  %v1435_v50 = vld [vmem:[#allocation2 + $0xc0] ss:$2 sm:$0xff]  ;;  %v2590_v21 = vld [vmem:[%s3005_s3 + $0xf8] sm:$0xff]  }
  0x3d   : > { %2353 = vmatprep.subr.bf16.mxu0 %v2555_v46  ;;  %2259 = vmatprep.subr.bf16.mxu1 %v2556_v53  ;;  %v872_v13 = vld [vmem:[#allocation2 + $0x92] ss:$2 sm:$0xff]  ;;  %v874_v51 = vld [vmem:[#allocation2 + $0xc2] ss:$2 sm:$0xff] }
  0x3e   : > { %2359 = vmatprep.mubr.bf16.mxu0 %v1303_v56  ;;  %v378_v44 = vmax.f32 %v346_v40, 0.0  ;;  %v379_v45 = vmax.f32 %v347_v41, 0.0  ;;  %v1433_v48 = vld [vmem:[#allocation2 + $0x90] ss:$2 sm:$0xff]  ;;  %v1439_v55 = vld [vmem:[#allocation2 + $0x120] ss:$2 sm:$0xff] }
  0x3f   : > { %v876_v52 = vld [vmem:[#allocation2 + $0xf2] ss:$2 sm:$0xff]  ;;  %v2578_v56 = vld [vmem:[%s3005_s3 + $0xc8] sm:$0xff]   ;;  %v1445_v58 = vpack.c.bf16 %v1435_v50, %v1433_v48 }
  0x40   : > { %2354 = vmatpush3.bf16.msra.mxu0 %v2555_v46  ;;  %2260 = vmatpush3.bf16.msra.mxu1 %v2556_v53  ;;  %v870_v46 = vld [vmem:[#allocation2 + $0x62] ss:$2 sm:$0xff]  ;;  %454 = vst [vmem:[#allocation2 + $0x181] sm:$0xff] %v378_v44  ;;  %455 = vst [vmem:[#allocation2 + $0x189] sm:$0xff] %v379_v45  ;;  %v880_v62 = vld [vmem:[#allocation2 + $0x152] ss:$2 sm:$0xff] }
  0x41   : > { %2355 = vmatprep.subr.bf16.mxu0 %v2557_v57  ;;  %2261 = vmatprep.subr.bf16.mxu1 %v2558_v59  ;;  %v882_v53 = vpack.c.bf16 %v872_v13, %v870_v46  ;;  %v1437_v54 = vld [vmem:[#allocation2 + $0xf0] ss:$2 sm:$0xff]  ;;  %v2584_v16 = vld [vmem:[%s3005_s3 + $0xe0] sm:$0xff]   ;;  %v2597_v50 = vld [vmem:[%s3005_s3 + $0x228] sm:$0xff]  }
  0x42   : > { %v878_v61 = vld [vmem:[#allocation2 + $0x122] ss:$2 sm:$0xff]  ;;  %v2591_v22 = vld [vmem:[%s3005_s3 + $0x1f8] sm:$0xff]  }
  0x43   : > { %v1006_v0 = vld [vmem:[#allocation2 + $0x18] ss:$2 sm:$0xff]  ;;  %v884_v2 = vpack.c.bf16 %v880_v62, %v878_v61  ;;  %v2589_v20 = vld [vmem:[%s3005_s3 + $0x1f0] sm:$0xff]  }
  0x44   : > { %2356 = vmatpush3.bf16.msra.mxu0 %v2557_v57  ;;  %2262 = vmatpush3.bf16.msra.mxu1 %v2558_v59  ;;  %v883_v57 = vpack.c.bf16 %v876_v52, %v874_v51  ;;  %v2579_v59 = vld [vmem:[%s3005_s3 + $0x1c8] sm:$0xff]   ;;  %v2585_v8 = vld [vmem:[%s3005_s3 + $0x1e0] sm:$0xff]   ;;  %v2594_v39 = vld [vmem:[%s3005_s3 + $0x210] sm:$0xff]  }
  0x45   : > { %2357 = vmatprep.subr.bf16.mxu0 %v2559_v60  ;;  %2271 = vmatprep.subr.bf16.mxu1 %v2560_v63  ;;  %v1012_v24 = vld [vmem:[#allocation2 + $0xa8] ss:$2 sm:$0xff]  ;;  %v2592_v25 = vld [vmem:[%s3005_s3 + $0x200] sm:$0xff]   ;;  %v2595_v46 = vld [vmem:[%s3005_s3 + $0x218] sm:$0xff]  }
  0x46   : > { %v1020_v38 = vld [vmem:[#allocation2 + $0x168] ss:$2 sm:$0xff]  ;;  %v2599_v52 = vld [vmem:[%s3005_s3 + $0x238] sm:$0xff]  }
  0x47   : > { %2264 = vmatmul.mubr.bf16.vlgmr.msra.gmra.mrb[0].mxu1 %v616_v3  ;;  %v1441_v3 = vld [vmem:[#allocation2 + $0x150] ss:$2 sm:$0xff]  ;;  %v1443_v4 = vld [vmem:[#allocation2 + $0x180] ss:$2 sm:$0xff]  ;;  %v1584_v44 = vld [vmem:[#allocation2 + $0x181] ss:$2 sm:$0xff] }
  0x48   : > { %2358 = vmatpush3.bf16.msra.mxu0 %v2559_v60  ;;  %2272 = vmatpush3.bf16.msra.mxu1 %v2560_v63  ;;  %v1446_v60 = vpack.c.bf16 %v1439_v55, %v1437_v54  ;;  %v2580_v63 = vld [vmem:[%s3005_s3 + $0xd0] sm:$0xff]  }
  0x49   : > { %2367 = vmatprep.subr.bf16.mxu0 %v2561_v1  ;;  %2273 = vmatprep.subr.bf16.mxu1 %v2562_v9  ;;  %v1719_v40 = vld [vmem:[#allocation2 + $0xf2] ss:$2 sm:$0xff]  ;;  %v1721_v41 = vld [vmem:[#allocation2 + $0x122] ss:$2 sm:$0xff] }
  0x4a   : > { %2267 = vmatprep.mubr.bf16.mxu1 %v617_v10  ;;  %v1711_v45 = vld [vmem:[#allocation2 + $0x32] ss:$2 sm:$0xff]  ;;  %v1728_v13 = vpack.c.bf16 %v1721_v41, %v1719_v40  ;;  %v1725_v54 = vld [vmem:[#allocation2 + $0x182] ss:$2 sm:$0xff] }
  0x4b   : > { %2360 = vmatmul.mubr.bf16.vlgmr.msra.gmra.mrb[0].mxu0 %v1304_v11  ;;  %v1447_v11 = vpack.c.bf16 %v1443_v4, %v1441_v3  ;;  %v2598_v51 = vld [vmem:[%s3005_s3 + $0x230] sm:$0xff]  }
  0x4c   : > { %2368 = vmatpush3.bf16.msra.mxu0 %v2561_v1  ;;  %2363 = vmatprep.mubr.bf16.mxu0 %v1305_v15  ;;  %v1008_v1 = vld [vmem:[#allocation2 + $0x48] ss:$2 sm:$0xff]  ;;  %v2583_v15 = vld [vmem:[%s3005_s3 + $0x1d8] sm:$0xff]  }
  0x4d   : > { %2369 = vmatprep.subr.bf16.mxu0 %v2563_v14  ;;  %2274 = vmatpush3.bf16.msra.mxu1 %v2562_v9  ;;  %v2582_v9 = vld [vmem:[%s3005_s3 + $0xd8] sm:$0xff]   ;;  %v1021_v10 = vpack.c.bf16 %v1008_v1, %v1006_v0 }
  0x4e   : > { %2275 = vmatprep.subr.bf16.mxu1 %v2564_v17  ;;  %v1715_v55 = vld [vmem:[#allocation2 + $0x92] ss:$2 sm:$0xff] }
  0x4f   : > { %2268 = vmatmul.mubr.bf16.gmra.mrb[4].mxu1 %v618_v23  ;;  %v1010_v23 = vld [vmem:[#allocation2 + $0x78] ss:$2 sm:$0xff] }
  0x50   : > { %2370 = vmatpush3.bf16.msra.mxu0 %v2563_v14  ;;  %2287 = vmatprep.mubr.bf16.mxu1 %v881_v27  ;;  %v1585_v14 = vpack.c.bf16 %v1572_v7, %v1570_v6  ;;  %v1016_v27 = vld [vmem:[#allocation2 + $0x108] ss:$2 sm:$0xff] }
  0x51   : > { %2371 = vmatprep.subr.bf16.mxu0 %v2565_v19  ;;  %2276 = vmatpush3.bf16.msra.mxu1 %v2564_v17  ;;  %v2586_v17 = vld [vmem:[%s3005_s3 + $0xe8] sm:$0xff]  }
  0x52   : > { %2277 = vmatprep.subr.bf16.mxu1 %v2566_v26 }
  0x53   : > { %2364 = vmatmul.mubr.bf16.gmra.mrb[4].mxu0 %v1306_v28  ;;  %v1022_v28 = vpack.c.bf16 %v1012_v24, %v1010_v23 }
  0x54   : > { %2372 = vmatpush3.bf16.msra.mxu0 %v2565_v19  ;;  %2383 = vmatprep.mubr.bf16.mxu0 %v1444_v29  ;;  %v2588_v19 = vld [vmem:[%s3005_s3 + $0xf0] sm:$0xff]  }
  0x55   : > { %2373 = vmatprep.subr.bf16.mxu0 %v2567_v30  ;;  %2278 = vmatpush3.bf16.msra.mxu1 %v2566_v26  ;;  %v1014_v26 = vld [vmem:[#allocation2 + $0xd8] ss:$2 sm:$0xff]  ;;  %v1574_v29 = vld [vmem:[#allocation2 + $0x91] ss:$2 sm:$0xff] }
  0x56   : > { %2279 = vmatprep.subr.bf16.mxu1 %v2568_v31 }
  0x58   : > { %2374 = vmatpush3.bf16.msra.mxu0 %v2567_v30  ;;  %v1576_v30 = vld [vmem:[#allocation2 + $0xc1] ss:$2 sm:$0xff] }
  0x59   : > { %2375 = vmatprep.subr.bf16.mxu0 %v2569_v32  ;;  %2280 = vmatpush3.bf16.msra.mxu1 %v2568_v31  ;;  %v1578_v31 = vld [vmem:[#allocation2 + $0xf1] ss:$2 sm:$0xff]  ;;  %v1586_v35 = vpack.c.bf16 %v1576_v30, %v1574_v29 }
  0x5a   : > { %2281 = vmatprep.subr.bf16.mxu1 %v2570_v33 }
  0x5c   : > { %2376 = vmatpush3.bf16.msra.mxu0 %v2569_v32  ;;  %v1580_v32 = vld [vmem:[#allocation2 + $0x121] ss:$2 sm:$0xff] }
  0x5d   : > { %2377 = vmatprep.subr.bf16.mxu0 %v2571_v34  ;;  %2282 = vmatpush3.bf16.msra.mxu1 %v2570_v33  ;;  %v2593_v33 = vld [vmem:[%s3005_s3 + $0x208] sm:$0xff]   ;;  %v1587_v36 = vpack.c.bf16 %v1580_v32, %v1578_v31 }
  0x5e   : > { %2283 = vmatprep.subr.bf16.mxu1 %v2572_v37 }
  0x60   : > { %2378 = vmatpush3.bf16.msra.mxu0 %v2571_v34  ;;  %v1023_v34 = vpack.c.bf16 %v1016_v27, %v1014_v26 }
  0x61   : > { %2379 = vmatprep.subr.bf16.mxu0 %v2573_v42  ;;  %2284 = vmatpush3.bf16.msra.mxu1 %v2572_v37  ;;  %v1018_v37 = vld [vmem:[#allocation2 + $0x138] ss:$2 sm:$0xff] }
  0x62   : > { %2285 = vmatprep.subr.bf16.mxu1 %v2574_v43 }
  0x64   : > { %2380 = vmatpush3.bf16.msra.mxu0 %v2573_v42  ;;  %v1024_v42 = vpack.c.bf16 %v1020_v38, %v1018_v37 }
  0x65   : > { %2381 = vmatprep.subr.bf16.mxu0 %v2575_v12  ;;  %2286 = vmatpush3.bf16.msra.mxu1 %v2574_v43  ;;  %v1582_v43 = vld [vmem:[#allocation2 + $0x151] ss:$2 sm:$0xff] }
  0x66   : > { %2295 = vmatprep.subr.bf16.mxu1 %v2576_v47 }
  0x68   : > { %2382 = vmatpush3.bf16.msra.mxu0 %v2575_v12  ;;  %2288 = vmatmul.mubr.bf16.vlgmr.msra.gmra.mrb[0].mxu1 %v882_v53  ;;  %v1713_v12 = vld [vmem:[#allocation2 + $0x62] ss:$2 sm:$0xff]  ;;  %v1723_v53 = vld [vmem:[#allocation2 + $0x152] ss:$2 sm:$0xff] }
  0x69   : > { %2391 = vmatprep.subr.bf16.mxu0 %v2577_v49  ;;  %2296 = vmatpush3.bf16.msra.mxu1 %v2576_v47  ;;  %v1588_v47 = vpack.c.bf16 %v1584_v44, %v1582_v43  ;;  %v1726_v48 = vpack.c.bf16 %v1713_v12, %v1711_v45 }
  0x6a   : > { %2297 = vmatprep.subr.bf16.mxu1 %v2578_v56  ;;  %2291 = vmatprep.mubr.bf16.mxu1 %v883_v57  ;;  %v1729_v57 = vpack.c.bf16 %v1725_v54, %v1723_v53 }
  0x6b   : > { %2384 = vmatmul.mubr.bf16.vlgmr.msra.gmra.mrb[0].mxu0 %v1445_v58 }
  0x6c   : > { %2392 = vmatpush3.bf16.msra.mxu0 %v2577_v49  ;;  %2387 = vmatprep.mubr.bf16.mxu0 %v1446_v60  ;;  %v2596_v49 = vld [vmem:[%s3005_s3 + $0x220] sm:$0xff]  }
  0x6d   : > { %2393 = vmatprep.subr.bf16.mxu0 %v2579_v59  ;;  %2298 = vmatpush3.bf16.msra.mxu1 %v2578_v56  ;;  %v1717_v56 = vld [vmem:[#allocation2 + $0xc2] ss:$2 sm:$0xff] }
  0x6e   : > { %2299 = vmatprep.subr.bf16.mxu1 %v2580_v63  ;;  %v1727_v58 = vpack.c.bf16 %v1717_v56, %v1715_v55 }
  0x70   : > { %2394 = vmatpush3.bf16.msra.mxu0 %v2579_v59  ;;  %2292 = vmatmul.mubr.bf16.gmra.mrb[4].mxu1 %v884_v2 }
  0x71   : > { %2395 = vmatprep.subr.bf16.mxu0 %v2581_v5  ;;  %2300 = vmatpush3.bf16.msra.mxu1 %v2580_v63 }
  0x72   : > { %2301 = vmatprep.subr.bf16.mxu1 %v2582_v9  ;;  %2311 = vmatprep.mubr.bf16.mxu1 %v1021_v10 }
  0x73   : > { %2388 = vmatmul.mubr.bf16.gmra.mrb[4].mxu0 %v1447_v11 }
  0x74   : > { %2396 = vmatpush3.bf16.msra.mxu0 %v2581_v5  ;;  %2407 = vmatprep.mubr.bf16.mxu0 %v1585_v14 }
  0x75   : > { %2397 = vmatprep.subr.bf16.mxu0 %v2583_v15  ;;  %2302 = vmatpush3.bf16.msra.mxu1 %v2582_v9 }
  0x76   : > { %2303 = vmatprep.subr.bf16.mxu1 %v2584_v16 }
  0x78   : > { %2398 = vmatpush3.bf16.msra.mxu0 %v2583_v15 }
  0x79   : > { %2399 = vmatprep.subr.bf16.mxu0 %v2585_v8  ;;  %2304 = vmatpush3.bf16.msra.mxu1 %v2584_v16 }
  0x7a   : > { %2305 = vmatprep.subr.bf16.mxu1 %v2586_v17 }
  0x7c   : > { %2400 = vmatpush3.bf16.msra.mxu0 %v2585_v8 }
  0x7d   : > { %2401 = vmatprep.subr.bf16.mxu0 %v2587_v18  ;;  %2306 = vmatpush3.bf16.msra.mxu1 %v2586_v17 }
  0x7e   : > { %2307 = vmatprep.subr.bf16.mxu1 %v2588_v19 }
  0x80   : > { %2402 = vmatpush3.bf16.msra.mxu0 %v2587_v18 }
  0x81   : > { %2403 = vmatprep.subr.bf16.mxu0 %v2589_v20  ;;  %2308 = vmatpush3.bf16.msra.mxu1 %v2588_v19 }
  0x82   : > { %2309 = vmatprep.subr.bf16.mxu1 %v2590_v21 }
  0x84   : > { %2404 = vmatpush3.bf16.msra.mxu0 %v2589_v20 }
  0x85   : > { %2405 = vmatprep.subr.bf16.mxu0 %v2591_v22  ;;  %2310 = vmatpush3.bf16.msra.mxu1 %v2590_v21 }
  0x86   : > { %2439 = vmatprep.subr.bf16.mxu1 %v2592_v25 }
  0x88   : > { %2406 = vmatpush3.bf16.msra.mxu0 %v2591_v22  ;;  %2312 = vmatmul.mubr.bf16.vlgmr.msra.gmra.mrb[0].mxu1 %v1022_v28 }
  0x89   : > { %2415 = vmatprep.subr.bf16.mxu0 %v2592_v25  ;;  %2447 = vmatpush3.bf16.msra.mxu1 %v2592_v25 }
  0x8a   : > { %2440 = vmatprep.subr.bf16.mxu1 %v2593_v33  ;;  %2315 = vmatprep.mubr.bf16.mxu1 %v1023_v34 }
  0x8b   : > { %2408 = vmatmul.mubr.bf16.vlgmr.msra.gmra.mrb[0].mxu0 %v1586_v35 }
  0x8c   : > { %2416 = vmatpush3.bf16.msra.mxu0 %v2592_v25  ;;  %2411 = vmatprep.mubr.bf16.mxu0 %v1587_v36 }
  0x8d   : > { %2417 = vmatprep.subr.bf16.mxu0 %v2593_v33  ;;  %2448 = vmatpush3.bf16.msra.mxu1 %v2593_v33 }
  0x8e   : > { %2441 = vmatprep.subr.bf16.mxu1 %v2594_v39 }
  0x90   : > { %2418 = vmatpush3.bf16.msra.mxu0 %v2593_v33  ;;  %2316 = vmatmul.mubr.bf16.gmra.mrb[4].mxu1 %v1024_v42 }
  0x91   : > { %2419 = vmatprep.subr.bf16.mxu0 %v2594_v39  ;;  %2449 = vmatpush3.bf16.msra.mxu1 %v2594_v39 }
  0x92   : > { %2442 = vmatprep.subr.bf16.mxu1 %v2595_v46  ;;  %2435 = vmatprep.mubr.bf16.mxu1 %v1728_v13 }
  0x93   : > { %2412 = vmatmul.mubr.bf16.gmra.mrb[4].mxu0 %v1588_v47 }
  0x94   : > { %2420 = vmatpush3.bf16.msra.mxu0 %v2594_v39  ;;  %2431 = vmatprep.mubr.bf16.mxu0 %v1726_v48 }
  0x95   : > { %2421 = vmatprep.subr.bf16.mxu0 %v2595_v46  ;;  %2450 = vmatpush3.bf16.msra.mxu1 %v2595_v46 }
  0x96   : > { %2443 = vmatprep.subr.bf16.mxu1 %v2596_v49 }
  0x98   : > { %2422 = vmatpush3.bf16.msra.mxu0 %v2595_v46 }
  0x99   : > { %2423 = vmatprep.subr.bf16.mxu0 %v2596_v49  ;;  %2451 = vmatpush3.bf16.msra.mxu1 %v2596_v49 }
  0x9a   : > { %2444 = vmatprep.subr.bf16.mxu1 %v2597_v50 }
  0x9c   : > { %2424 = vmatpush3.bf16.msra.mxu0 %v2596_v49 }
  0x9d   : > { %2425 = vmatprep.subr.bf16.mxu0 %v2597_v50  ;;  %2452 = vmatpush3.bf16.msra.mxu1 %v2597_v50 }
  0x9e   : > { %2445 = vmatprep.subr.bf16.mxu1 %v2598_v51 }
  0xa0   : > { %2426 = vmatpush3.bf16.msra.mxu0 %v2597_v50 }
  0xa1   : > { %2427 = vmatprep.subr.bf16.mxu0 %v2598_v51  ;;  %2453 = vmatpush3.bf16.msra.mxu1 %v2598_v51 }
  0xa2   : > { %2446 = vmatprep.subr.bf16.mxu1 %v2599_v52 }
  0xa4   : > { %2428 = vmatpush3.bf16.msra.mxu0 %v2598_v51 }
  0xa5   : > { %2429 = vmatprep.subr.bf16.mxu0 %v2599_v52  ;;  %2454 = vmatpush3.bf16.msra.mxu1 %v2599_v52 }
  0xa8   : > { %2430 = vmatpush3.bf16.msra.mxu0 %v2599_v52  ;;  %2436 = vmatmul.mubr.bf16.vlgmr.msra.gmra.mrb[8].mxu1 %v1729_v57 }
  0xab   : > { %2432 = vmatmul.mubr.bf16.vlgmr.msra.gmra.mrb[0].mxu0 %v1727_v58 }
 0x15b   : > { %v2313_v59 = vpop.f32.mrb[0].mxu1 }
 0x15c   : > { %v1107_v60 = vpop.f32.mrb[1].mxu1 }
 0x15d   : > { %v2314_v61 = vpop.f32.mrb[2].mxu1 }
 0x15e   : > { %v1110_v62 = vpop.f32.mrb[3].mxu1 }
 0x163   : > { %v2317_v63 = vpop.f32.mrb[4].mxu1 }
 0x164   : > { %v1123_v0 = vpop.f32.mrb[5].mxu1 }
 0x165   : > { %v2318_v1 = vpop.f32.mrb[6].mxu1 }
 0x166   : > { %v2413_v2 = vpop.f32.mrb[4].mxu0  ;;  %v1126_v3 = vpop.f32.mrb[7].mxu1 }
 0x167   : > { %v2459_v4 = vadd.f32 %v2413_v2, %v2317_v63  ;;  %v1687_v5 = vpop.f32.mrb[5].mxu0 }
 0x168   : > { %v2461_v6 = vadd.f32 %v1687_v5, %v1123_v0  ;;  %v2414_v7 = vpop.f32.mrb[6].mxu0 }
 0x169   : > { %v2463_v9 = vadd.f32 %v2414_v7, %v2318_v1  ;;  %v1690_v10 = vpop.f32.mrb[7].mxu0 }
 0x16a   : > { %v2465_v11 = vadd.f32 %v1690_v10, %v1126_v3 }
 0x17b   : > { %v2437_v14 = vpop.f32.mrb[8].mxu1 }
 0x17c   : > { %v2460_v15 = vadd.f32 %v2459_v4, %v2437_v14  ;;  %v1828_v16 = vpop.f32.mrb[9].mxu1 }
 0x17d   : > { %v2462_v8 = vadd.f32 %v2461_v6, %v1828_v16  ;;  %v2438_v17 = vpop.f32.mrb[10].mxu1 }
 0x17e   : > { %v2433_v18 = vpop.f32.mrb[0].mxu0  ;;  %1857 = vst [vmem:[%s231_s25 + $0x30] sm:$0xff] %v2460_v15  ;;  %v2464_v19 = vadd.f32 %v2463_v9, %v2438_v17  ;;  %v1831_v20 = vpop.f32.mrb[11].mxu1  ;;  %v1879_v44 = vmul.f32 %v2460_v15, %v2460_v15 }
 0x17f   : > { %v2455_v21 = vadd.f32 %v2433_v18, %v2313_v59  ;;  %v1812_v22 = vpop.f32.mrb[1].mxu0  ;;  %1855 = vst [vmem:[%s231_s25 + $0x20] sm:$0xff] %v2462_v8  ;;  %v2466_v23 = vadd.f32 %v2465_v11, %v1831_v20  ;;  %v1877_v38 = vmul.f32 %v2462_v8, %v2462_v8 }
 0x180   : > { %v2456_v24 = vadd.f32 %v1812_v22, %v1107_v60  ;;  %v2434_v25 = vpop.f32.mrb[2].mxu0  ;;  %1858 = vst [vmem:[%s231_s25 + $0x38] sm:$0xff] %v2464_v19  ;;  %v1880_v46 = vmul.f32 %v2464_v19, %v2464_v19 }
 0x181   : > { %1853 = vst [vmem:[%s231_s25 + $0x10] sm:$0xff] %v2455_v21  ;;  %v2457_v26 = vadd.f32 %v2434_v25, %v2314_v61  ;;  %v1815_v27 = vpop.f32.mrb[3].mxu0  ;;  %1856 = vst [vmem:[%s231_s25 + $0x28] sm:$0xff] %v2466_v23  ;;  %v1875_v32 = vmul.f32 %v2455_v21, %v2455_v21  ;;  %v1878_v42 = vmul.f32 %v2466_v23, %v2466_v23 }
 0x182   : > { %1851 = vst [vmem:[%s231_s25] sm:$0xff] %v2456_v24  ;;  %v2458_v28 = vadd.f32 %v1815_v27, %v1110_v62  ;;  %v1873_v29 = vmul.f32 %v2456_v24, %v2456_v24 }
 0x183   : > { %1854 = vst [vmem:[%s231_s25 + $0x18] sm:$0xff] %v2457_v26  ;;  %v1876_v35 = vmul.f32 %v2457_v26, %v2457_v26 }
 0x184   : > { %1852 = vst [vmem:[%s231_s25 + $0x8] sm:$0xff] %v2458_v28  ;;  %v1859_v30 = vadd.f32 %v2458_v28, %v2456_v24  ;;  %v1874_v31 = vmul.f32 %v2458_v28, %v2458_v28 }
 0x186   : > { %v1860_v33 = vadd.f32 %v2455_v21, %v1859_v30  ;;  %v1881_v34 = vadd.f32 %v1874_v31, %v1873_v29 }
 0x188   : > { %v1882_v36 = vadd.f32 %v1881_v34, %v1875_v32  ;;  %v1861_v37 = vadd.f32 %v2457_v26, %v1860_v33 }
 0x18a   : > { %v1862_v39 = vadd.f32 %v2462_v8, %v1861_v37  ;;  %v1883_v40 = vadd.f32 %v1882_v36, %v1876_v35 }
 0x18c   : > { %v1863_v41 = vadd.f32 %v2466_v23, %v1862_v39  ;;  %v1884_v43 = vadd.f32 %v1883_v40, %v1877_v38 }
 0x18e   : > { %v1864_v45 = vadd.f32 %v2460_v15, %v1863_v41  ;;  %v1885_v12 = vadd.f32 %v1884_v43, %v1878_v42 }
 0x190   : > { %v1865_v13 = vadd.f32 %v2464_v19, %v1864_v45  ;;  %v1886_v47 = vadd.f32 %v1885_v12, %v1879_v44 }
 0x192   : > { %v1866_v48 = vrot.slane %v1865_v13, 4  ;;  %v1887_v49 = vadd.f32 %v1886_v47, %v1880_v46 }
 0x194   : > { %v1867_v50 = vadd.f32 %v1866_v48, %v1865_v13  ;;  %v1888_v51 = vrot.slane %v1887_v49, 4 }
 0x196   : > { %v1868_v52 = vrot.slane %v1867_v50, 2  ;;  %v1889_v53 = vadd.f32 %v1888_v51, %v1887_v49 }
 0x198   : > { %v1869_v54 = vadd.f32 %v1868_v52, %v1867_v50  ;;  %v1890_v55 = vrot.slane %v1889_v53, 2 }
 0x19a   : > { %v1870_v56 = vrot.slane %v1869_v54, 1  ;;  %v1891_v57 = vadd.f32 %v1890_v55, %v1889_v53 }
 0x19c   : > { %v1871_v58 = vadd.f32 %v1870_v56, %v1869_v54  ;;  %v1892_v59 = vrot.slane %v1891_v57, 1 }
 0x19e   : > { %1872 = vst [vmem:[%s236_s28] sm:$0x1] %v1871_v58  ;;  %v1893_v60 = vadd.f32 %v1892_v59, %v1891_v57 }
 0x1a0   : > { %1894 = vst [vmem:[%s236_s28 + $0x1] sm:$0x1] %v1893_v60 }
 0x1a1 PF: > { %s16_s18 = sadd.s32 1, %s2606_s18  }
 0x1a2   : > { %p13_p5 = scmp.ge.s32.totalorder %s16_s18, 4  }
 0x1a4   :  { %15 = sbr.rel (!%p13_p5) target bundleno = 1 (0x1), region = 150 }

</bundles_post_ra>
